<compile_context>
chip_gen: v7x
topology: tpu7x:2x2x1
jax: 0.10.0
libtpu: 0.0.40
codegen_flags: <defaults>
</compile_context>

<pallas_src>
import functools

import jax
import jax.numpy as jnp
import numpy as np
from jax import lax
from jax.experimental import pallas as pl
from jax.experimental.pallas import tpu as pltpu

LN_EPS = 1e-5                       # torch.nn.LayerNorm default
_GELU_C = 0.7978845608028654        # sqrt(2/pi), for gelu(approximate='tanh')
_LANE = 128
_SUBLANE = 8


def _round_up(n, m):
    return ((n + m - 1) // m) * m


def _gelu_tanh(x):
    return 0.5 * x * (1.0 + jnp.tanh(_GELU_C * (x + 0.044715 * x * x * x)))


# ------------------------------ fused kernel --------------------------------

def _stack_kernel(cols_ref, ew_ref, head_ref, dww_ref, bvec_ref,
                  pw1w_ref, pw1b_ref, pw2w_ref, o_ref, xbuf_ref, *, C_real):
    """One (batch, T-tile) grid step of the whole ConvNeXtStack forward.

    cols_ref : (1, 1, R, Ke*Cin) bf16  im2col'd causally padded input window
                                       (R = halo + tile rows)
    ew_ref   : (Ke*Cin, Cp)      bf16  embed conv weight (im2col layout)
    head_ref : (5, Cp)           f32   [embed_b, norm_w, norm_b, final_w, final_b]
    dww_ref  : (NB, K, Cp)       f32   depthwise conv weights
    bvec_ref : (NB, 5, Cp)       f32   [dw_b, ln_w, ln_b, pw2_b, gamma] per block
    pw1w_ref : (NB, Cp, ICp)     bf16
    pw1b_ref : (NB, 1, ICp)      f32
    pw2w_ref : (NB, ICp, Cp)     bf16
    o_ref    : (1, TT, Cp)       f32   output tile (positions [t0, t0+TT))
    xbuf_ref : (PR + R, Cp) f32 VMEM scratch; rows [0, PR) stay zero and serve
               as the in-tile causal lookback of every depthwise conv.
    """
    R = cols_ref.shape[2]
    TT = o_ref.shape[1]
    HB = R - TT                                   # recomputed activation halo
    NB, K, Cp = dww_ref.shape
    PR = xbuf_ref.shape[0] - R
    t0 = pl.program_id(1) * TT

    inv_c = 1.0 / C_real

    def layernorm(x, w, b):
        # Padded channels are exactly zero, so sums over Cp equal sums over the
        # real C; divide by the real C.  E[x^2]-E[x]^2 avoids masking pad lanes.
        mean = jnp.sum(x, axis=-1, keepdims=True) * inv_c
        ex2 = jnp.sum(x * x, axis=-1, keepdims=True) * inv_c
        var = jnp.maximum(ex2 - mean * mean, 0.0)
        return (x - mean) * lax.rsqrt(var + LN_EPS) * w + b

    # ---- embed CausalConv1d as ONE im2col matmul (MXU, bf16 -> f32 acc) ----
    y = jnp.dot(cols_ref[0, 0], ew_ref[...], preferred_element_type=jnp.float32)
    y = y + head_ref[0]
    y = layernorm(y, head_ref[1], head_ref[2])

    # Rows whose absolute position is < 0 must be exactly zero (the reference
    # zero-pads every block's causal conv); only low tiles contain such rows.
    pos = t0 - HB + lax.broadcasted_iota(jnp.int32, (R, 1), 0)
    in_seq = pos >= 0
    y = jnp.where(in_seq, y, 0.0)

    # ---- VMEM activation buffer: [0,PR) zero lookback, [PR,PR+R) activation --
    if PR > 0:
        xbuf_ref[pl.ds(0, PR), :] = jnp.zeros((PR, Cp), jnp.float32)
    xbuf_ref[pl.ds(PR, R), :] = y

    # ---- ConvNeXt blocks; the activation never leaves VMEM ------------------
    def block(nb, carry):
        xall = xbuf_ref[...]                       # (PR+R, Cp)
        x_in = xall[PR:PR + R]
        dw = dww_ref[nb]                           # (K, Cp)
        bv = bvec_ref[nb]                          # (5, Cp)

        # depthwise causal conv (VPU); tap K-1 is x_in itself
        h = x_in * dw[K - 1]
        for k in range(K - 1):                     # short fixed loop, unrolled
            off = PR - (K - 1) + k
            h = h + xall[off:off + R] * dw[k]
        h = layernorm(h + bv[0], bv[1], bv[2])

        # pointwise MLP (MXU, bf16 -> f32 acc) + tanh-GELU
        h1 = jnp.dot(h.astype(jnp.bfloat16), pw1w_ref[nb],
                     preferred_element_type=jnp.float32) + pw1b_ref[nb]
        h1 = _gelu_tanh(h1)
        h2 = jnp.dot(h1.astype(jnp.bfloat16), pw2w_ref[nb],
                     preferred_element_type=jnp.float32) + bv[3]

        # in-place residual (xbuf is the canonical activation); keep rows that
        # lie before the sequence start exactly zero for the next block's taps.
        xbuf_ref[pl.ds(PR, R), :] = jnp.where(in_seq, x_in + h2 * bv[4], 0.0)
        return carry

    lax.fori_loop(0, NB, block, 0)

    # ---- final LayerNorm over the tile rows only -----------------------------
    out = layernorm(xbuf_ref[pl.ds(PR + HB, TT), :], head_ref[3], head_ref[4])
    o_ref[0] = out.astype(o_ref.dtype)


# ------------------------------ call wrapper ---------------------------------

def _full_spec(shape):
    zeros = (0,) * len(shape)
    return pl.BlockSpec(shape, lambda b, t, _z=zeros: _z)


def _stack_call(tiles, kp, cfg, *, T, TT):
    B, NT, R, KC = tiles.shape
    C = cfg["channels"]
    K = cfg["kernel_size"]
    Cp = kp["head"].shape[-1]
    ICp = kp["pw1_b"].shape[-1]
    NB = kp["dw_w"].shape[0]
    PR = _round_up(K - 1, _SUBLANE)

    w_bytes = int(sum(int(np.prod(kp[n].shape)) * kp[n].dtype.itemsize
                      for n in ("embed_w", "head", "dw_w", "blk_vec",
                                "pw1_w", "pw1_b", "pw2_w")))
    # double-buffered cols/out tiles + scratch + rough temporaries + weights
    vmem_need = (2 * R * KC * 2 + 2 * TT * Cp * 4 + (PR + R) * Cp * 4
                 + R * ICp * 4 + 3 * R * Cp * 4 + 2 * w_bytes)
    # v7x has 64 MiB/TC physical VMEM -> keep the default tile small enough that
    # this stays well under ~48 MiB; v5e/v6e (128 MiB) may raise toward ~96 MiB.
    vmem_limit = int(min(96 * 2**20, max(48 * 2**20, 2 * vmem_need)))

    cost = pl.CostEstimate(
        flops=int(2 * B * NT * R * (KC * Cp + NB * 2 * Cp * ICp)),
        transcendentals=int(B * NT * R * NB * ICp),
        bytes_accessed=int(tiles.size) * 2 + w_bytes + B * T * Cp * 4)

    kern = functools.partial(_stack_kernel, C_real=C)
    return pl.pallas_call(
        kern,
        out_shape=jax.ShapeDtypeStruct((B, T, Cp), jnp.float32),
        grid=(B, NT),
        in_specs=[
            pl.BlockSpec((1, 1, R, KC), lambda b, t: (b, t, 0, 0)),
            _full_spec(kp["embed_w"].shape),
            _full_spec(kp["head"].shape),
            _full_spec(kp["dw_w"].shape),
            _full_spec(kp["blk_vec"].shape),
            _full_spec(kp["pw1_w"].shape),
            _full_spec(kp["pw1_b"].shape),
            _full_spec(kp["pw2_w"].shape),
        ],
        out_specs=pl.BlockSpec((1, TT, Cp), lambda b, t: (b, t, 0)),
        scratch_shapes=[pltpu.VMEM((PR + R, Cp), jnp.float32)],
        compiler_params=pltpu.CompilerParams(
            dimension_semantics=("parallel", "parallel"),
            vmem_limit_bytes=vmem_limit),
        cost_estimate=cost,
    )(tiles, kp["embed_w"], kp["head"], kp["dw_w"], kp["blk_vec"],
      kp["pw1_w"], kp["pw1_b"], kp["pw2_w"])


def _choose_tile(T, tt_max):
    if T <= tt_max:
        return T
    for cand in range(min(tt_max, T), 0, -1):
        if cand % _SUBLANE == 0 and T % cand == 0:
            return cand
    return T                                       # no even split: single tile


def convnext_stack_forward(x_ncl, kp, cfg, *, tt_max=512):
    """Pallas forward. x_ncl: (B, in_channels, T) like the PyTorch module."""
    delay = cfg["delay"]
    Ke = cfg["embed_kernel_size"]
    K = cfg["kernel_size"]
    NB = cfg["n_blocks"]
    C = cfg["channels"]

    x = jnp.transpose(x_ncl, (0, 2, 1))            # (B, T, Cin)
    B, T, Cin = x.shape
    TT = _choose_tile(T, tt_max)
    NT = T // TT
    HB = _round_up(NB * (K - 1), _SUBLANE)         # recompute halo, sublane aligned
    if NT == 1:
        HB = 0                                     # single resident tile needs no halo
    R = HB + TT

    # one-time causal pad + im2col of the (small) input; per-tile overlapping
    # windows carry the recompute halo so the T tiles are fully independent.
    lpad = Ke - 1 - delay
    xp = jnp.pad(x, ((0, 0), (HB + lpad, delay), (0, 0)))
    cols = jnp.concatenate([xp[:, k:k + T + HB, :] for k in range(Ke)],
                           axis=-1).astype(jnp.bfloat16)       # (B, T+HB, Ke*Cin)
    tiles = jnp.stack([cols[:, i * TT:i * TT + R, :] for i in range(NT)],
                      axis=1)                                   # (B, NT, R, Ke*Cin)

    y = _stack_call(tiles, kp, cfg, T=T, TT=TT)                 # (B, T, Cp) f32
    return jnp.transpose(y[..., :C], (0, 2, 1))                 # back to (B, C, T)


# --------------------------- params (torch layout) ---------------------------

def init_params(key, cfg):
    """Deterministic synthetic params in PyTorch layouts (module __init__ shapes)."""
    Cin, C = cfg["in_channels"], cfg["channels"]
    IC, NB = cfg["intermediate_channels"], cfg["n_blocks"]
    Ke, K = cfg["embed_kernel_size"], cfg["kernel_size"]
    keys = iter(jax.random.split(key, 8 + NB * 10))

    def rnd(shape, scale=0.02):
        return scale * jax.random.normal(next(keys), shape, jnp.float32)

    tp = {
        "embed_w": rnd((C, Cin, Ke)),        # Conv1d weight (out, in, K)
        "embed_b": rnd((C,)),
        "norm_w": 1.0 + rnd((C,)),
        "norm_b": rnd((C,)),
        "final_w": 1.0 + rnd((C,)),
        "final_b": rnd((C,)),
        "blocks": [],
    }
    for _ in range(NB):
        tp["blocks"].append({
            "dw_w": rnd((C, 1, K)),          # depthwise Conv1d weight
            "dw_b": rnd((C,)),
            "ln_w": 1.0 + rnd((C,)),
            "ln_b": rnd((C,)),
            "pw1_w": rnd((IC, C)),           # Linear weight (out, in)
            "pw1_b": rnd((IC,)),
            "pw2_w": rnd((C, IC)),
            "pw2_b": rnd((C,)),
            "gamma": jnp.full((C,), 1.0 / NB, jnp.float32),
        })
    return tp


def _pad_axis(a, axis, size):
    pad = size - a.shape[axis]
    if pad <= 0:
        return a
    widths = [(0, 0)] * a.ndim
    widths[axis] = (0, pad)
    return jnp.pad(a, widths)


def to_kernel_params(tp):
    """Torch-layout params -> stacked, lane-dense (channels zero-padded to
    multiples of 128) layouts used by the fused kernel."""
    C, Cin, Ke = tp["embed_w"].shape
    IC = tp["blocks"][0]["pw1_b"].shape[0] if tp["blocks"] else C
    Cp = _round_up(C, _LANE)
    ICp = _round_up(IC, _LANE)

    padc = lambda v: _pad_axis(v, -1, Cp)
    padi = lambda v: _pad_axis(v, -1, ICp)

    ew = padc(jnp.transpose(tp["embed_w"], (2, 1, 0)).reshape(Ke * Cin, C))
    head = jnp.stack([padc(tp["embed_b"]), padc(tp["norm_w"]), padc(tp["norm_b"]),
                      padc(tp["final_w"]), padc(tp["final_b"])], axis=0)

    dww, bvec, pw1w, pw1b, pw2w = [], [], [], [], []
    for b in tp["blocks"]:
        dww.append(padc(jnp.transpose(b["dw_w"][:, 0, :], (1, 0))))           # (K, Cp)
        bvec.append(jnp.stack([padc(b["dw_b"]), padc(b["ln_w"]), padc(b["ln_b"]),
                               padc(b["pw2_b"]), padc(b["gamma"])], axis=0))  # (5, Cp)
        pw1w.append(_pad_axis(padi(jnp.transpose(b["pw1_w"], (1, 0))), 0, Cp))    # (Cp, ICp)
        pw1b.append(padi(b["pw1_b"])[None, :])                                    # (1, ICp)
        pw2w.append(_pad_axis(padc(jnp.transpose(b["pw2_w"], (1, 0))), 0, ICp))   # (ICp, Cp)
    return {
        "embed_w": ew.astype(jnp.bfloat16),
        "head": head.astype(jnp.float32),
        "dw_w": jnp.stack(dww).astype(jnp.float32),
        "blk_vec": jnp.stack(bvec).astype(jnp.float32),
        "pw1_w": jnp.stack(pw1w).astype(jnp.bfloat16),
        "pw1_b": jnp.stack(pw1b).astype(jnp.float32),
        "pw2_w": jnp.stack(pw2w).astype(jnp.bfloat16),
    }


# ----------------------- plain-JAX reference (for check) ---------------------

def _ln_ref(x, w, b):
    mean = jnp.mean(x, axis=-1, keepdims=True)
    var = jnp.mean((x - mean) ** 2, axis=-1, keepdims=True)
    return (x - mean) * lax.rsqrt(var + LN_EPS) * w + b


def reference_forward(x_ncl, tp, cfg):
    delay, Ke, K = cfg["delay"], cfg["embed_kernel_size"], cfg["kernel_size"]
    dn = ("NCH", "OIH", "NCH")
    y = lax.conv_general_dilated(x_ncl, tp["embed_w"], (1,),
                                 [(Ke - 1 - delay, delay)], dimension_numbers=dn)
    y = y + tp["embed_b"][None, :, None]
    x = _ln_ref(jnp.transpose(y, (0, 2, 1)), tp["norm_w"], tp["norm_b"])
    for b in tp["blocks"]:
        identity = x
        h = lax.conv_general_dilated(jnp.transpose(x, (0, 2, 1)), b["dw_w"], (1,),
                                     [(K - 1, 0)], dimension_numbers=dn,
                                     feature_group_count=cfg["channels"])
        h = h + b["dw_b"][None, :, None]
        h = _ln_ref(jnp.transpose(h, (0, 2, 1)), b["ln_w"], b["ln_b"])
        h = h @ b["pw1_w"].T + b["pw1_b"]
        h = _gelu_tanh(h)
        h = h @ b["pw2_w"].T + b["pw2_b"]
        x = identity + h * b["gamma"]
    x = _ln_ref(x, tp["final_w"], tp["final_b"])
    return jnp.transpose(x, (0, 2, 1))


if __name__ == "__main__":
    cfg = dict(in_channels=8, channels=32, intermediate_channels=64,
               n_blocks=4, delay=1, embed_kernel_size=7, kernel_size=7)
    assert cfg["delay"] * 2 + 1 <= cfg["embed_kernel_size"]

    B, T = 2, 64
    key = jax.random.PRNGKey(0)
    kx, kp_key = jax.random.split(key)
    x = jax.random.normal(kx, (B, cfg["in_channels"], T), jnp.float32)

    tparams = init_params(kp_key, cfg)
    kparams = to_kernel_params(tparams)

    ref = reference_forward(x, tparams, cfg)

    # multi-tile path: 4 T-tiles of 16 rows, exercising the recompute-halo logic
    out_tiled = jax.block_until_ready(
        convnext_stack_forward(x, kparams, cfg, tt_max=16))
    assert out_tiled.shape == (B, cfg["channels"], T)
    np.testing.assert_allclose(np.asarray(out_tiled), np.asarray(ref),
                               rtol=4e-2, atol=4e-2)

    # single-tile path (whole sequence resident in VMEM)
    out_full = jax.block_until_ready(convnext_stack_forward(x, kparams, cfg))
    np.testing.assert_allclose(np.asarray(out_full), np.asarray(ref),
                               rtol=4e-2, atol=4e-2)

    print("KERNEL_OK")
</pallas_src>

<mosaic_0001>
module attributes {stable_mosaic.version = 11 : i64} {
  func.func @_stack_kernel(%arg0: i32, %arg1: i32, %arg2: memref<1x1x40x56xbf16, #tpu.memory_space<vmem>>, %arg3: memref<56x128xbf16, #tpu.memory_space<vmem>>, %arg4: memref<5x128xf32, #tpu.memory_space<vmem>>, %arg5: memref<4x7x128xf32, #tpu.memory_space<vmem>>, %arg6: memref<4x5x128xf32, #tpu.memory_space<vmem>>, %arg7: memref<4x128x128xbf16, #tpu.memory_space<vmem>>, %arg8: memref<4x1x128xf32, #tpu.memory_space<vmem>>, %arg9: memref<4x128x128xbf16, #tpu.memory_space<vmem>>, %arg10: memref<1x16x128xf32, #tpu.memory_space<vmem>>, %arg11: memref<48x128xf32, #tpu.memory_space<vmem>>) attributes {dimension_semantics = [#tpu.dimension_semantics<parallel>, #tpu.dimension_semantics<parallel>], iteration_bounds = array<i64: 2, 4>, scalar_prefetch = 0 : i64, scratch_operands = 1 : i64, tpu.core_type = #tpu.core_type<tc>, window_params = [{transform_indices = @transform_0, window_bounds = array<i64: 1, 1, 40, 56>}, {pipeline_mode = #tpu.pipeline_mode<synchronous>, transform_indices = @transform_1, window_bounds = array<i64: 56, 128>}, {pipeline_mode = #tpu.pipeline_mode<synchronous>, transform_indices = @transform_2, window_bounds = array<i64: 5, 128>}, {pipeline_mode = #tpu.pipeline_mode<synchronous>, transform_indices = @transform_3, window_bounds = array<i64: 4, 7, 128>}, {pipeline_mode = #tpu.pipeline_mode<synchronous>, transform_indices = @transform_4, window_bounds = array<i64: 4, 5, 128>}, {pipeline_mode = #tpu.pipeline_mode<synchronous>, transform_indices = @transform_5, window_bounds = array<i64: 4, 128, 128>}, {pipeline_mode = #tpu.pipeline_mode<synchronous>, transform_indices = @transform_6, window_bounds = array<i64: 4, 1, 128>}, {pipeline_mode = #tpu.pipeline_mode<synchronous>, transform_indices = @transform_7, window_bounds = array<i64: 4, 128, 128>}, {transform_indices = @transform_8, window_bounds = array<i64: 1, 16, 128>}]} {
    %c16_i32 = arith.constant 16 : i32
    %0 = arith.muli %arg1, %c16_i32 : i32
    %c0 = arith.constant 0 : index
    %c0_0 = arith.constant 0 : index
    %c0_1 = arith.constant 0 : index
    %c0_2 = arith.constant 0 : index
    %1 = vector.load %arg2[%c0, %c0_0, %c0_1, %c0_2] : memref<1x1x40x56xbf16, #tpu.memory_space<vmem>>, vector<1x1x40x56xbf16>
    %2 = vector.shape_cast %1 : vector<1x1x40x56xbf16> to vector<40x56xbf16>
    %c0_3 = arith.constant 0 : index
    %c0_4 = arith.constant 0 : index
    %3 = vector.load %arg3[%c0_3, %c0_4] : memref<56x128xbf16, #tpu.memory_space<vmem>>, vector<56x128xbf16>
    %cst = arith.constant dense<0.000000e+00> : vector<40x128xf32>
    %4 = tpu.matmul %2, %3, %cst {dimension_numbers = #tpu.dot_dimension_numbers<[1], [0], [0], [1], [0, 0, 1, 1], [], []>} : vector<40x56xbf16>, vector<56x128xbf16>, vector<40x128xf32> -> vector<40x128xf32>
    %c0_5 = arith.constant 0 : index
    %c0_6 = arith.constant 0 : index
    %5 = vector.load %arg4[%c0_5, %c0_6] : memref<5x128xf32, #tpu.memory_space<vmem>>, vector<1x128xf32>
    %6 = vector.shape_cast %5 : vector<1x128xf32> to vector<128xf32>
    %7 = vector.shape_cast %6 : vector<128xf32> to vector<1x128xf32>
    %8 = vector.broadcast %7 : vector<1x128xf32> to vector<40x128xf32>
    %9 = arith.addf %4, %8 : vector<40x128xf32>
    %c1 = arith.constant 1 : index
    %c0_7 = arith.constant 0 : index
    %10 = vector.load %arg4[%c1, %c0_7] : memref<5x128xf32, #tpu.memory_space<vmem>>, vector<1x128xf32>
    %11 = vector.shape_cast %10 : vector<1x128xf32> to vector<128xf32>
    %c2 = arith.constant 2 : index
    %c0_8 = arith.constant 0 : index
    %12 = vector.load %arg4[%c2, %c0_8] : memref<5x128xf32, #tpu.memory_space<vmem>>, vector<1x128xf32>
    %13 = vector.shape_cast %12 : vector<1x128xf32> to vector<128xf32>
    %cst_9 = arith.constant dense<0.000000e+00> : vector<40xf32>
    %14 = vector.multi_reduction <add>, %9, %cst_9 [1] : vector<40x128xf32> to vector<40xf32>
    %15 = vector.shape_cast %14 : vector<40xf32> to vector<40x1xf32>
    %cst_10 = arith.constant 3.125000e-02 : f32
    %16 = vector.broadcast %cst_10 : f32 to vector<40x1xf32>
    %17 = arith.mulf %15, %16 : vector<40x1xf32>
    %18 = arith.mulf %9, %9 : vector<40x128xf32>
    %cst_11 = arith.constant dense<0.000000e+00> : vector<40xf32>
    %19 = vector.multi_reduction <add>, %18, %cst_11 [1] : vector<40x128xf32> to vector<40xf32>
    %20 = vector.shape_cast %19 : vector<40xf32> to vector<40x1xf32>
    %cst_12 = arith.constant 3.125000e-02 : f32
    %21 = vector.broadcast %cst_12 : f32 to vector<40x1xf32>
    %22 = arith.mulf %20, %21 : vector<40x1xf32>
    %23 = arith.mulf %17, %17 : vector<40x1xf32>
    %24 = arith.subf %22, %23 : vector<40x1xf32>
    %cst_13 = arith.constant 0.000000e+00 : f32
    %25 = vector.broadcast %cst_13 : f32 to vector<40x1xf32>
    %26 = arith.maximumf %24, %25 : vector<40x1xf32>
    %27 = vector.broadcast %17 : vector<40x1xf32> to vector<40x128xf32>
    %28 = arith.subf %9, %27 : vector<40x128xf32>
    %cst_14 = arith.constant 9.99999974E-6 : f32
    %29 = vector.broadcast %cst_14 : f32 to vector<40x1xf32>
    %30 = arith.addf %26, %29 : vector<40x1xf32>
    %31 = math.rsqrt %30 : vector<40x1xf32>
    %32 = vector.broadcast %31 : vector<40x1xf32> to vector<40x128xf32>
    %33 = arith.mulf %28, %32 : vector<40x128xf32>
    %34 = vector.shape_cast %11 : vector<128xf32> to vector<1x128xf32>
    %35 = vector.broadcast %34 : vector<1x128xf32> to vector<40x128xf32>
    %36 = arith.mulf %33, %35 : vector<40x128xf32>
    %37 = vector.shape_cast %13 : vector<128xf32> to vector<1x128xf32>
    %38 = vector.broadcast %37 : vector<1x128xf32> to vector<40x128xf32>
    %39 = arith.addf %36, %38 : vector<40x128xf32>
    %c24_i32 = arith.constant 24 : i32
    %40 = arith.subi %0, %c24_i32 : i32
    %41 = tpu.iota {dimensions = array<i32: 0>} : vector<40x1xi32>
    %42 = vector.broadcast %40 : i32 to vector<40x1xi32>
    %43 = arith.addi %42, %41 : vector<40x1xi32>
    %c0_i32 = arith.constant 0 : i32
    %44 = vector.broadcast %c0_i32 : i32 to vector<40x1xi32>
    %45 = arith.cmpi sge, %43, %44 : vector<40x1xi32>
    %cst_15 = arith.constant 0.000000e+00 : f32
    %46 = vector.shape_cast %45 : vector<40x1xi1> to vector<40x1xi1>
    %47 = vector.broadcast %46 : vector<40x1xi1> to vector<40x128xi1>
    %48 = vector.broadcast %cst_15 : f32 to vector<40x128xf32>
    %49 = arith.select %47, %39, %48 : vector<40x128xi1>, vector<40x128xf32>
    %cst_16 = arith.constant 0.000000e+00 : f32
    %50 = vector.broadcast %cst_16 : f32 to vector<8x128xf32>
    %c0_17 = arith.constant 0 : index
    %c0_18 = arith.constant 0 : index
    %51 = vector.load %arg11[%c0_17, %c0_18] : memref<48x128xf32, #tpu.memory_space<vmem>>, vector<8x128xf32>
    tpu.vector_store %arg11[%c0_17, %c0_18], %50 {strides = array<i32>} : memref<48x128xf32, #tpu.memory_space<vmem>>, vector<8x128xf32>,
    %c8 = arith.constant 8 : index
    %c0_19 = arith.constant 0 : index
    %52 = vector.load %arg11[%c8, %c0_19] : memref<48x128xf32, #tpu.memory_space<vmem>>, vector<40x128xf32>
    tpu.vector_store %arg11[%c8, %c0_19], %49 {strides = array<i32>} : memref<48x128xf32, #tpu.memory_space<vmem>>, vector<40x128xf32>,
    %c0_i32_20 = arith.constant 0 : i32
    %c4_i32 = arith.constant 4 : i32
    %53 = arith.addi %c0_i32_20, %c4_i32 : i32
    %c1_i32 = arith.constant 1 : i32
    scf.for %arg12 = %c0_i32_20 to %53 step %c1_i32  : i32 {
      %c0_34 = arith.constant 0 : index
      %c0_35 = arith.constant 0 : index
      %88 = vector.load %arg11[%c0_34, %c0_35] : memref<48x128xf32, #tpu.memory_space<vmem>>, vector<48x128xf32>
      %89 = vector.extract_strided_slice %88 {offsets = [8, 0], sizes = [40, 128], strides = [1, 1]} : vector<48x128xf32> to vector<40x128xf32>
      %90 = arith.index_cast %arg12 : i32 to index
      %c0_36 = arith.constant 0 : index
      %c0_37 = arith.constant 0 : index
      %91 = vector.load %arg5[%90, %c0_36, %c0_37] : memref<4x7x128xf32, #tpu.memory_space<vmem>>, vector<1x7x128xf32>
      %92 = vector.shape_cast %91 : vector<1x7x128xf32> to vector<7x128xf32>
      %93 = arith.index_cast %arg12 : i32 to index
      %c0_38 = arith.constant 0 : index
      %c0_39 = arith.constant 0 : index
      %94 = vector.load %arg6[%93, %c0_38, %c0_39] : memref<4x5x128xf32, #tpu.memory_space<vmem>>, vector<1x5x128xf32>
      %95 = vector.shape_cast %94 : vector<1x5x128xf32> to vector<5x128xf32>
      %96 = vector.extract_strided_slice %92 {offsets = [6, 0], sizes = [1, 128], strides = [1, 1]} : vector<7x128xf32> to vector<1x128xf32>
      %97 = vector.shape_cast %96 : vector<1x128xf32> to vector<128xf32>
      %98 = vector.shape_cast %97 : vector<128xf32> to vector<1x128xf32>
      %99 = vector.broadcast %98 : vector<1x128xf32> to vector<40x128xf32>
      %100 = arith.mulf %89, %99 : vector<40x128xf32>
      %101 = vector.extract_strided_slice %88 {offsets = [2, 0], sizes = [40, 128], strides = [1, 1]} : vector<48x128xf32> to vector<40x128xf32>
      %102 = vector.extract_strided_slice %92 {offsets = [0, 0], sizes = [1, 128], strides = [1, 1]} : vector<7x128xf32> to vector<1x128xf32>
      %103 = vector.shape_cast %102 : vector<1x128xf32> to vector<128xf32>
      %104 = vector.shape_cast %103 : vector<128xf32> to vector<1x128xf32>
      %105 = vector.broadcast %104 : vector<1x128xf32> to vector<40x128xf32>
      %106 = arith.mulf %101, %105 : vector<40x128xf32>
      %107 = arith.addf %100, %106 : vector<40x128xf32>
      %108 = vector.extract_strided_slice %88 {offsets = [3, 0], sizes = [40, 128], strides = [1, 1]} : vector<48x128xf32> to vector<40x128xf32>
      %109 = vector.extract_strided_slice %92 {offsets = [1, 0], sizes = [1, 128], strides = [1, 1]} : vector<7x128xf32> to vector<1x128xf32>
      %110 = vector.shape_cast %109 : vector<1x128xf32> to vector<128xf32>
      %111 = vector.shape_cast %110 : vector<128xf32> to vector<1x128xf32>
      %112 = vector.broadcast %111 : vector<1x128xf32> to vector<40x128xf32>
      %113 = arith.mulf %108, %112 : vector<40x128xf32>
      %114 = arith.addf %107, %113 : vector<40x128xf32>
      %115 = vector.extract_strided_slice %88 {offsets = [4, 0], sizes = [40, 128], strides = [1, 1]} : vector<48x128xf32> to vector<40x128xf32>
      %116 = vector.extract_strided_slice %92 {offsets = [2, 0], sizes = [1, 128], strides = [1, 1]} : vector<7x128xf32> to vector<1x128xf32>
      %117 = vector.shape_cast %116 : vector<1x128xf32> to vector<128xf32>
      %118 = vector.shape_cast %117 : vector<128xf32> to vector<1x128xf32>
      %119 = vector.broadcast %118 : vector<1x128xf32> to vector<40x128xf32>
      %120 = arith.mulf %115, %119 : vector<40x128xf32>
      %121 = arith.addf %114, %120 : vector<40x128xf32>
      %122 = vector.extract_strided_slice %88 {offsets = [5, 0], sizes = [40, 128], strides = [1, 1]} : vector<48x128xf32> to vector<40x128xf32>
      %123 = vector.extract_strided_slice %92 {offsets = [3, 0], sizes = [1, 128], strides = [1, 1]} : vector<7x128xf32> to vector<1x128xf32>
      %124 = vector.shape_cast %123 : vector<1x128xf32> to vector<128xf32>
      %125 = vector.shape_cast %124 : vector<128xf32> to vector<1x128xf32>
      %126 = vector.broadcast %125 : vector<1x128xf32> to vector<40x128xf32>
      %127 = arith.mulf %122, %126 : vector<40x128xf32>
      %128 = arith.addf %121, %127 : vector<40x128xf32>
      %129 = vector.extract_strided_slice %88 {offsets = [6, 0], sizes = [40, 128], strides = [1, 1]} : vector<48x128xf32> to vector<40x128xf32>
      %130 = vector.extract_strided_slice %92 {offsets = [4, 0], sizes = [1, 128], strides = [1, 1]} : vector<7x128xf32> to vector<1x128xf32>
      %131 = vector.shape_cast %130 : vector<1x128xf32> to vector<128xf32>
      %132 = vector.shape_cast %131 : vector<128xf32> to vector<1x128xf32>
      %133 = vector.broadcast %132 : vector<1x128xf32> to vector<40x128xf32>
      %134 = arith.mulf %129, %133 : vector<40x128xf32>
      %135 = arith.addf %128, %134 : vector<40x128xf32>
      %136 = vector.extract_strided_slice %88 {offsets = [7, 0], sizes = [40, 128], strides = [1, 1]} : vector<48x128xf32> to vector<40x128xf32>
      %137 = vector.extract_strided_slice %92 {offsets = [5, 0], sizes = [1, 128], strides = [1, 1]} : vector<7x128xf32> to vector<1x128xf32>
      %138 = vector.shape_cast %137 : vector<1x128xf32> to vector<128xf32>
      %139 = vector.shape_cast %138 : vector<128xf32> to vector<1x128xf32>
      %140 = vector.broadcast %139 : vector<1x128xf32> to vector<40x128xf32>
      %141 = arith.mulf %136, %140 : vector<40x128xf32>
      %142 = arith.addf %135, %141 : vector<40x128xf32>
      %143 = vector.extract_strided_slice %95 {offsets = [0, 0], sizes = [1, 128], strides = [1, 1]} : vector<5x128xf32> to vector<1x128xf32>
      %144 = vector.shape_cast %143 : vector<1x128xf32> to vector<128xf32>
      %145 = vector.shape_cast %144 : vector<128xf32> to vector<1x128xf32>
      %146 = vector.broadcast %145 : vector<1x128xf32> to vector<40x128xf32>
      %147 = arith.addf %142, %146 : vector<40x128xf32>
      %148 = vector.extract_strided_slice %95 {offsets = [1, 0], sizes = [1, 128], strides = [1, 1]} : vector<5x128xf32> to vector<1x128xf32>
      %149 = vector.shape_cast %148 : vector<1x128xf32> to vector<128xf32>
      %150 = vector.extract_strided_slice %95 {offsets = [2, 0], sizes = [1, 128], strides = [1, 1]} : vector<5x128xf32> to vector<1x128xf32>
      %151 = vector.shape_cast %150 : vector<1x128xf32> to vector<128xf32>
      %cst_40 = arith.constant dense<0.000000e+00> : vector<40xf32>
      %152 = vector.multi_reduction <add>, %147, %cst_40 [1] : vector<40x128xf32> to vector<40xf32>
      %153 = vector.shape_cast %152 : vector<40xf32> to vector<40x1xf32>
      %cst_41 = arith.constant 3.125000e-02 : f32
      %154 = vector.broadcast %cst_41 : f32 to vector<40x1xf32>
      %155 = arith.mulf %153, %154 : vector<40x1xf32>
      %156 = arith.mulf %147, %147 : vector<40x128xf32>
      %cst_42 = arith.constant dense<0.000000e+00> : vector<40xf32>
      %157 = vector.multi_reduction <add>, %156, %cst_42 [1] : vector<40x128xf32> to vector<40xf32>
      %158 = vector.shape_cast %157 : vector<40xf32> to vector<40x1xf32>
      %cst_43 = arith.constant 3.125000e-02 : f32
      %159 = vector.broadcast %cst_43 : f32 to vector<40x1xf32>
      %160 = arith.mulf %158, %159 : vector<40x1xf32>
      %161 = arith.mulf %155, %155 : vector<40x1xf32>
      %162 = arith.subf %160, %161 : vector<40x1xf32>
      %cst_44 = arith.constant 0.000000e+00 : f32
      %163 = vector.broadcast %cst_44 : f32 to vector<40x1xf32>
      %164 = arith.maximumf %162, %163 : vector<40x1xf32>
      %165 = vector.broadcast %155 : vector<40x1xf32> to vector<40x128xf32>
      %166 = arith.subf %147, %165 : vector<40x128xf32>
      %cst_45 = arith.constant 9.99999974E-6 : f32
      %167 = vector.broadcast %cst_45 : f32 to vector<40x1xf32>
      %168 = arith.addf %164, %167 : vector<40x1xf32>
      %169 = math.rsqrt %168 : vector<40x1xf32>
      %170 = vector.broadcast %169 : vector<40x1xf32> to vector<40x128xf32>
      %171 = arith.mulf %166, %170 : vector<40x128xf32>
      %172 = vector.shape_cast %149 : vector<128xf32> to vector<1x128xf32>
      %173 = vector.broadcast %172 : vector<1x128xf32> to vector<40x128xf32>
      %174 = arith.mulf %171, %173 : vector<40x128xf32>
      %175 = vector.shape_cast %151 : vector<128xf32> to vector<1x128xf32>
      %176 = vector.broadcast %175 : vector<1x128xf32> to vector<40x128xf32>
      %177 = arith.addf %174, %176 : vector<40x128xf32>
      %178 = arith.truncf %177 : vector<40x128xf32> to vector<40x128xbf16>
      %179 = arith.index_cast %arg12 : i32 to index
      %c0_46 = arith.constant 0 : index
      %c0_47 = arith.constant 0 : index
      %180 = vector.load %arg7[%179, %c0_46, %c0_47] : memref<4x128x128xbf16, #tpu.memory_space<vmem>>, vector<1x128x128xbf16>
      %181 = vector.shape_cast %180 : vector<1x128x128xbf16> to vector<128x128xbf16>
      %cst_48 = arith.constant dense<0.000000e+00> : vector<40x128xf32>
      %182 = tpu.matmul %178, %181, %cst_48 {dimension_numbers = #tpu.dot_dimension_numbers<[1], [0], [0], [1], [0, 0, 1, 1], [], []>} : vector<40x128xbf16>, vector<128x128xbf16>, vector<40x128xf32> -> vector<40x128xf32>
      %183 = arith.index_cast %arg12 : i32 to index
      %c0_49 = arith.constant 0 : index
      %c0_50 = arith.constant 0 : index
      %184 = vector.load %arg8[%183, %c0_49, %c0_50] : memref<4x1x128xf32, #tpu.memory_space<vmem>>, vector<1x1x128xf32>
      %185 = vector.shape_cast %184 : vector<1x1x128xf32> to vector<1x128xf32>
      %186 = vector.broadcast %185 : vector<1x128xf32> to vector<40x128xf32>
      %187 = arith.addf %182, %186 : vector<40x128xf32>
      %cst_51 = arith.constant 5.000000e-01 : f32
      %188 = vector.broadcast %cst_51 : f32 to vector<40x128xf32>
      %189 = arith.mulf %188, %187 : vector<40x128xf32>
      %cst_52 = arith.constant 4.471500e-02 : f32
      %190 = vector.broadcast %cst_52 : f32 to vector<40x128xf32>
      %191 = arith.mulf %190, %187 : vector<40x128xf32>
      %192 = arith.mulf %191, %187 : vector<40x128xf32>
      %193 = arith.mulf %192, %187 : vector<40x128xf32>
      %194 = arith.addf %187, %193 : vector<40x128xf32>
      %cst_53 = arith.constant 0.797884583 : f32
      %195 = vector.broadcast %cst_53 : f32 to vector<40x128xf32>
      %196 = arith.mulf %195, %194 : vector<40x128xf32>
      %197 = math.tanh %196 : vector<40x128xf32>
      %cst_54 = arith.constant 1.000000e+00 : f32
      %198 = vector.broadcast %cst_54 : f32 to vector<40x128xf32>
      %199 = arith.addf %198, %197 : vector<40x128xf32>
      %200 = arith.mulf %189, %199 : vector<40x128xf32>
      %201 = arith.truncf %200 : vector<40x128xf32> to vector<40x128xbf16>
      %202 = arith.index_cast %arg12 : i32 to index
      %c0_55 = arith.constant 0 : index
      %c0_56 = arith.constant 0 : index
      %203 = vector.load %arg9[%202, %c0_55, %c0_56] : memref<4x128x128xbf16, #tpu.memory_space<vmem>>, vector<1x128x128xbf16>
      %204 = vector.shape_cast %203 : vector<1x128x128xbf16> to vector<128x128xbf16>
      %cst_57 = arith.constant dense<0.000000e+00> : vector<40x128xf32>
      %205 = tpu.matmul %201, %204, %cst_57 {dimension_numbers = #tpu.dot_dimension_numbers<[1], [0], [0], [1], [0, 0, 1, 1], [], []>} : vector<40x128xbf16>, vector<128x128xbf16>, vector<40x128xf32> -> vector<40x128xf32>
      %206 = vector.extract_strided_slice %95 {offsets = [3, 0], sizes = [1, 128], strides = [1, 1]} : vector<5x128xf32> to vector<1x128xf32>
      %207 = vector.shape_cast %206 : vector<1x128xf32> to vector<128xf32>
      %208 = vector.shape_cast %207 : vector<128xf32> to vector<1x128xf32>
      %209 = vector.broadcast %208 : vector<1x128xf32> to vector<40x128xf32>
      %210 = arith.addf %205, %209 : vector<40x128xf32>
      %211 = vector.extract_strided_slice %95 {offsets = [4, 0], sizes = [1, 128], strides = [1, 1]} : vector<5x128xf32> to vector<1x128xf32>
      %212 = vector.shape_cast %211 : vector<1x128xf32> to vector<128xf32>
      %213 = vector.shape_cast %212 : vector<128xf32> to vector<1x128xf32>
      %214 = vector.broadcast %213 : vector<1x128xf32> to vector<40x128xf32>
      %215 = arith.mulf %210, %214 : vector<40x128xf32>
      %216 = arith.addf %89, %215 : vector<40x128xf32>
      %cst_58 = arith.constant 0.000000e+00 : f32
      %217 = vector.shape_cast %45 : vector<40x1xi1> to vector<40x1xi1>
      %218 = vector.broadcast %217 : vector<40x1xi1> to vector<40x128xi1>
      %219 = vector.broadcast %cst_58 : f32 to vector<40x128xf32>
      %220 = arith.select %218, %216, %219 : vector<40x128xi1>, vector<40x128xf32>
      %c8_59 = arith.constant 8 : index
      %c0_60 = arith.constant 0 : index
      %221 = vector.load %arg11[%c8_59, %c0_60] : memref<48x128xf32, #tpu.memory_space<vmem>>, vector<40x128xf32>
      tpu.vector_store %arg11[%c8_59, %c0_60], %220 {strides = array<i32>} : memref<48x128xf32, #tpu.memory_space<vmem>>, vector<40x128xf32>,
    }
    %c4_i32_21 = arith.constant 4 : i32
    %c32 = arith.constant 32 : index
    %c0_22 = arith.constant 0 : index
    %54 = vector.load %arg11[%c32, %c0_22] : memref<48x128xf32, #tpu.memory_space<vmem>>, vector<16x128xf32>
    %c3 = arith.constant 3 : index
    %c0_23 = arith.constant 0 : index
    %55 = vector.load %arg4[%c3, %c0_23] : memref<5x128xf32, #tpu.memory_space<vmem>>, vector<1x128xf32>
    %56 = vector.shape_cast %55 : vector<1x128xf32> to vector<128xf32>
    %c4 = arith.constant 4 : index
    %c0_24 = arith.constant 0 : index
    %57 = vector.load %arg4[%c4, %c0_24] : memref<5x128xf32, #tpu.memory_space<vmem>>, vector<1x128xf32>
    %58 = vector.shape_cast %57 : vector<1x128xf32> to vector<128xf32>
    %cst_25 = arith.constant dense<0.000000e+00> : vector<16xf32>
    %59 = vector.multi_reduction <add>, %54, %cst_25 [1] : vector<16x128xf32> to vector<16xf32>
    %60 = vector.shape_cast %59 : vector<16xf32> to vector<16x1xf32>
    %cst_26 = arith.constant 3.125000e-02 : f32
    %61 = vector.broadcast %cst_26 : f32 to vector<16x1xf32>
    %62 = arith.mulf %60, %61 : vector<16x1xf32>
    %63 = arith.mulf %54, %54 : vector<16x128xf32>
    %cst_27 = arith.constant dense<0.000000e+00> : vector<16xf32>
    %64 = vector.multi_reduction <add>, %63, %cst_27 [1] : vector<16x128xf32> to vector<16xf32>
    %65 = vector.shape_cast %64 : vector<16xf32> to vector<16x1xf32>
    %cst_28 = arith.constant 3.125000e-02 : f32
    %66 = vector.broadcast %cst_28 : f32 to vector<16x1xf32>
    %67 = arith.mulf %65, %66 : vector<16x1xf32>
    %68 = arith.mulf %62, %62 : vector<16x1xf32>
    %69 = arith.subf %67, %68 : vector<16x1xf32>
    %cst_29 = arith.constant 0.000000e+00 : f32
    %70 = vector.broadcast %cst_29 : f32 to vector<16x1xf32>
    %71 = arith.maximumf %69, %70 : vector<16x1xf32>
    %72 = vector.broadcast %62 : vector<16x1xf32> to vector<16x128xf32>
    %73 = arith.subf %54, %72 : vector<16x128xf32>
    %cst_30 = arith.constant 9.99999974E-6 : f32
    %74 = vector.broadcast %cst_30 : f32 to vector<16x1xf32>
    %75 = arith.addf %71, %74 : vector<16x1xf32>
    %76 = math.rsqrt %75 : vector<16x1xf32>
    %77 = vector.broadcast %76 : vector<16x1xf32> to vector<16x128xf32>
    %78 = arith.mulf %73, %77 : vector<16x128xf32>
    %79 = vector.shape_cast %56 : vector<128xf32> to vector<1x128xf32>
    %80 = vector.broadcast %79 : vector<1x128xf32> to vector<16x128xf32>
    %81 = arith.mulf %78, %80 : vector<16x128xf32>
    %82 = vector.shape_cast %58 : vector<128xf32> to vector<1x128xf32>
    %83 = vector.broadcast %82 : vector<1x128xf32> to vector<16x128xf32>
    %84 = arith.addf %81, %83 : vector<16x128xf32>
    %c0_31 = arith.constant 0 : index
    %c0_32 = arith.constant 0 : index
    %c0_33 = arith.constant 0 : index
    %85 = vector.load %arg10[%c0_31, %c0_32, %c0_33] : memref<1x16x128xf32, #tpu.memory_space<vmem>>, vector<1x16x128xf32>
    %86 = vector.shape_cast %85 : vector<1x16x128xf32> to vector<16x128xf32>
    %87 = vector.shape_cast %84 : vector<16x128xf32> to vector<1x16x128xf32>
    tpu.vector_store %arg10[%c0_31, %c0_32, %c0_33], %87 {strides = array<i32>} : memref<1x16x128xf32, #tpu.memory_space<vmem>>, vector<1x16x128xf32>,
    return
  }
  func.func @transform_0(%arg0: i32, %arg1: i32) -> (i32, i32, i32, i32) {
    %c0_i32 = arith.constant 0 : i32
    %c0_i32_0 = arith.constant 0 : i32
    %c0_i32_1 = arith.constant 0 : i32
    return %arg0, %arg1, %c0_i32, %c0_i32_0 : i32, i32, i32, i32
  }
  func.func @transform_1(%arg0: i32, %arg1: i32) -> (i32, i32) {
    %c0_i32 = arith.constant 0 : i32
    %c0_i32_0 = arith.constant 0 : i32
    %c0_i32_1 = arith.constant 0 : i32
    return %c0_i32, %c0_i32_0 : i32, i32
  }
  func.func @transform_2(%arg0: i32, %arg1: i32) -> (i32, i32) {
    %c0_i32 = arith.constant 0 : i32
    %c0_i32_0 = arith.constant 0 : i32
    %c0_i32_1 = arith.constant 0 : i32
    return %c0_i32, %c0_i32_0 : i32, i32
  }
  func.func @transform_3(%arg0: i32, %arg1: i32) -> (i32, i32, i32) {
    %c0_i32 = arith.constant 0 : i32
    %c0_i32_0 = arith.constant 0 : i32
    %c0_i32_1 = arith.constant 0 : i32
    %c0_i32_2 = arith.constant 0 : i32
    return %c0_i32, %c0_i32_0, %c0_i32_1 : i32, i32, i32
  }
  func.func @transform_4(%arg0: i32, %arg1: i32) -> (i32, i32, i32) {
    %c0_i32 = arith.constant 0 : i32
    %c0_i32_0 = arith.constant 0 : i32
    %c0_i32_1 = arith.constant 0 : i32
    %c0_i32_2 = arith.constant 0 : i32
    return %c0_i32, %c0_i32_0, %c0_i32_1 : i32, i32, i32
  }
  func.func @transform_5(%arg0: i32, %arg1: i32) -> (i32, i32, i32) {
    %c0_i32 = arith.constant 0 : i32
    %c0_i32_0 = arith.constant 0 : i32
    %c0_i32_1 = arith.constant 0 : i32
    %c0_i32_2 = arith.constant 0 : i32
    return %c0_i32, %c0_i32_0, %c0_i32_1 : i32, i32, i32
  }
  func.func @transform_6(%arg0: i32, %arg1: i32) -> (i32, i32, i32) {
    %c0_i32 = arith.constant 0 : i32
    %c0_i32_0 = arith.constant 0 : i32
    %c0_i32_1 = arith.constant 0 : i32
    %c0_i32_2 = arith.constant 0 : i32
    return %c0_i32, %c0_i32_0, %c0_i32_1 : i32, i32, i32
  }
  func.func @transform_7(%arg0: i32, %arg1: i32) -> (i32, i32, i32) {
    %c0_i32 = arith.constant 0 : i32
    %c0_i32_0 = arith.constant 0 : i32
    %c0_i32_1 = arith.constant 0 : i32
    %c0_i32_2 = arith.constant 0 : i32
    return %c0_i32, %c0_i32_0, %c0_i32_1 : i32, i32, i32
  }
  func.func @transform_8(%arg0: i32, %arg1: i32) -> (i32, i32, i32) {
    %c0_i32 = arith.constant 0 : i32
    %c0_i32_0 = arith.constant 0 : i32
    return %arg0, %arg1, %c0_i32 : i32, i32, i32
  }
}

</mosaic_0001>

<bundles_post_ra>
// kernel: tpu_custom_call.1
= control target key start
LH: loop header
LB: loop body
LE: loop exit
PB: predicated region body
PF: predicated region fallthrough
CT: control target
= control target key end

     0   :  { %s2798_s0 = inlined_call_operand.hbm [shape: bf16[2,4,40,56], index: 0, kind: input, shape index: {}]   ;;  %s2799_s1 = inlined_call_operand.vmem [shape: bf16[56,128], index: 1, kind: input, shape index: {}]   ;;  %s2800_s2 = inlined_call_operand.vmem [shape: f32[5,128], index: 2, kind: input, shape index: {}]   ;;  %s2801_s3 = inlined_call_operand.vmem [shape: f32[4,7,128], index: 3, kind: input, shape index: {}]   ;;  %s2802_s4 = inlined_call_operand.vmem [shape: f32[4,5,128], index: 4, kind: input, shape index: {}]   ;;  %s2803_s5 = inlined_call_operand.hbm [shape: bf16[4,128,128], index: 5, kind: input, shape index: {}]   ;;  %s2804_s6 = inlined_call_operand.vmem [shape: f32[4,1,128], index: 6, kind: input, shape index: {}]   ;;  %s2805_s7 = inlined_call_operand.hbm [shape: bf16[4,128,128], index: 7, kind: input, shape index: {}]   ;;  %s2806_s8 = inlined_call_operand.hbm [shape: f32[2,64,128], index: 8, kind: output, shape index: {}]  }
   0x1   :  { %2819 = sst [smem:[#allocation19_spill]] %s2803_s5 }
   0x2   :  { %2820 = sst [smem:[#allocation20_spill]] %s2804_s6 }
   0x3   :  { %2821 = sst [smem:[#allocation21_spill]] %s2805_s7 }
   0x4   :  { %2822 = sst [smem:[#allocation22_spill]] %s2806_s8 }
   0x5   :  { %13 = vsyncpa [#allocation4], 0 }
   0x6   :  { %15 = vsyncpa [#allocation4 + $0x1], 0 }
   0x7   :  { %16 = vsyncpa [#allocation7], 0 }
   0x8   :  { %17 = vsyncpa [#allocation5], 0 }
   0x9   :  { %19 = vsyncpa [#allocation5 + $0x1], 0  ;;  %s2092_s27 = smov 0   ;;  %s2094_s28 = smov 0  }
   0xa   :  { %s2096_s29 = smov 0   ;;  %s2098_s30 = smov 0  }
   0xb   :  { %s2100_s9 = smov 0   ;;  %s2102_s10 = smov 0  }
   0xc   :  { %s2104_s11 = smov 0   ;;  %s2106_s12 = smov 0  }
   0xd LB: > { %2823 = sst [smem:[#allocation13_spill]] %s2001_s27  ;;  %s1491_s13 = sadd.s32 4294967295, %s2029_s12   ;;  %s2029_s12 = sphi %s2106_s12, %s25_s12   ;;  %s2025_s11 = sphi %s2104_s11, %s2859_s11   ;;  %s2021_s10 = sphi %s2102_s10, %s2853_s10   ;;  %s2017_s9 = sphi %s2100_s9, %s2858_s9   ;;  %s2013_s30 = sphi %s2098_s30, %s2852_s30   ;;  %s2009_s29 = sphi %s2096_s29, %s2857_s29   ;;  %s2005_s28 = sphi %s2094_s28, %s2856_s28   ;;  %s2001_s27 = sphi %s2092_s27, %s2855_s27  }
   0xe   : > { %2824 = sst [smem:[#allocation14_spill]] %s2017_s9  ;;  %s1492_s14 = sadd.s32 4294967294, %s2029_s12  }
   0xf   : > { %2825 = sst [smem:[#allocation15_spill]] %s2021_s10  ;;  %p59_p0 = scmp.ne.s32.totalorder %s2005_s28, %s2001_s27 }
  0x10   : > { %p2136_p1 = scmp.eq.s32.totalorder %s1491_s13, 0  ;;  %p2140_p2 = scmp.eq.s32.totalorder %s1491_s13, 7 }
  0x11   : > { %p238_p3 = scmp.eq.s32.totalorder %s1492_s14, 7  ;;  %p1493_p5 = scmp.ge.s32.totalorder %s2029_s12, 1 }
  0x12   : > { %s2826_s15 = scalar_select %p2136_p1, 1, 0 }
  0x13   : > { %s2827_s16 = scalar_select %p2140_p2, 1, 0 }
  0x14   : > { %p2146_p4 = por %p2136_p1, %p59_p0  ;;  %p2151_p6 = por %p238_p3, %p59_p0 }
  0x15   : > { %p245_p7 = scmp.lt.s32.totalorder %s2029_s12, 9  ;;  %s2035_s20 = smov [#allocation6]  }
  0x16   : > { %s2828_s17 = scalar_select %p2146_p4, 1, 0 }
  0x17   : > { %s2829_s18 = scalar_select %p2151_p6, 1, 0 }
  0x18   : > { %p2156_p8 = pnand %p1493_p5, %p245_p7  ;;  %s269_s21 = sshll.u32 %s2035_s20, 4  ;;  %s270_s21 = int_to_ptr.vmem [resolvable:$true] %s269_s21 }
  0x19   : > { %2830 = sst [smem:[#allocation16_spill]] %s2829_s18  ;;  %s2036_s23 = smov [#allocation8]  }
  0x1a   : > { %s2831_s19 = scalar_select %p2156_p8, 1, 0 }
  0x1b   : > { %p1677_p9 = pneg %p2156_p8  ;;  %s285_s24 = sshll.u32 %s2036_s23, 4  ;;  %s2168_s24 = int_to_ptr.vmem [resolvable:$true] %s285_s24 }
  0x1c   : > { %s2833_s5 = sld [smem:[#allocation19_spill]] }
  0x1d   : > { %p2164_p10 = pnand %p1677_p9, %p2136_p1 }
  0x1f   : > { %p1839_p12 = pneg %p2164_p10 }
  0x22   : > { %s1837_s13 = scalar_lea.hbm %s2833_s5, 4096 }
  0x23   : > { %p1838_p11 = scmp.ne.s32.totalorder %s2833_s5, %s1837_s13  ;;  %p1844_p3 = scmp.lt.u32.totalorder %s1837_s13, %s2833_s5 }
  0x25   : > { %p1840_p13 = pnand %p1839_p12, %p1838_p11 }
  0x27   : > { %p1841_p0 = pneg %p1840_p13 }
  0x29   : > { %p1846_p5 = pnand %p1844_p3, %p1841_p0 }
  0x2b   : > { %1849 = shalt.err (!%p1846_p5)
}
  0x2c   : > { %s1850_s23 = scalar_lea.vmem %s270_s21, 4096  ;;  %p1858_p1 = scmp.lt.s32.totalorder %s270_s21, %s270_s21 }
  0x2d   : > { %p1851_p7 = scmp.ne.s32.totalorder %s270_s21, %s1850_s23  ;;  %p1859_p4 = scmp.lt.s32.totalorder %s1850_s23, %s1850_s23 }
  0x2f   : > { %p1853_p9 = pnand %p1851_p7, %p1839_p12  ;;  %p1860_p8 = por %p1859_p4, %p1858_p1 }
  0x31   : > { %p1854_p6 = pneg %p1853_p9 }
  0x33   : > { %p1861_p2 = pnand %p1860_p8, %p1854_p6 }
  0x35   : > { %1864 = shalt.err (!%p1861_p2)
}
  0x36   : > { %s2814_s25 = smov 64   ;;  %s2815_s26 = smov 4  }
  0x37   : > { %1680 = dma.hbm_to_vmem [thread:$0]  (!%p2164_p10), %s2833_s5, 4096, %s270_s21, [#allocation7], %s2814_s25, %s2814_s25, %s2815_s26  }
  0x38   : > { %s2834_s7 = sld [smem:[#allocation21_spill]] }
  0x3e   : > { %s1865_s20 = scalar_lea.hbm %s2834_s7, 4096 }
  0x3f   : > { %p1866_p1 = scmp.ne.s32.totalorder %s2834_s7, %s1865_s20  ;;  %p1872_p6 = scmp.lt.u32.totalorder %s1865_s20, %s2834_s7 }
  0x41   : > { %p1868_p2 = pnand %p1866_p1, %p1839_p12 }
  0x43   : > { %p1869_p4 = pneg %p1868_p2 }
  0x45   : > { %p1874_p8 = pnand %p1872_p6, %p1869_p4 }
  0x47   : > { %1877 = shalt.err (!%p1874_p8)
}
  0x48   : > { %s1878_s21 = scalar_lea.vmem %s2168_s24, 4096  ;;  %p1886_p3 = scmp.lt.s32.totalorder %s2168_s24, %s2168_s24 }
  0x49   : > { %p1879_p11 = scmp.ne.s32.totalorder %s2168_s24, %s1878_s21  ;;  %p1887_p5 = scmp.lt.s32.totalorder %s1878_s21, %s1878_s21 }
  0x4b   : > { %p1881_p13 = pnand %p1879_p11, %p1839_p12  ;;  %p1888_p7 = por %p1887_p5, %p1886_p3 }
  0x4d   : > { %p1882_p0 = pneg %p1881_p13 }
  0x4f   : > { %p1889_p9 = pnand %p1888_p7, %p1882_p0 }
  0x51   : > { %1892 = shalt.err (!%p1889_p9)
}
  0x52   : > { %1683 = dma.hbm_to_vmem [thread:$0]  (!%p2164_p10), %s2834_s7, 4096, %s2168_s24, [#allocation7], %s2814_s25, %s2814_s25, %s2815_s26  }
  0x53   : > { %s34_s9 = sadd.s32 1, %s2021_s10  ;;  %s37_s22 = sadd.s32 1, %s2025_s11 }
  0x54   : > { %p35_p12 = scmp.ge.s32.totalorder %s34_s9, 4  ;;  %s46_s27 = sadd.s32 1, %s2009_s29 }
  0x55   : > { %p53_p1 = scmp.ne.s32.totalorder %s2009_s29, %s2005_s28  ;;  %p54_p2 = scmp.eq.s32.totalorder %s2029_s12, 0 }
  0x56   : > { %s2861_s9 = smov (%p35_p12, %s34_s9), 0  ;;  %s2863_s22 = smov (!%p35_p12, %s37_s22), %s2025_s11 }
  0x57   : > { %2835 = sst [smem:[#allocation17_spill]] %s2861_s9  ;;  %s42_s18 = ssub.s32 %s2021_s10, %s2861_s9 }
  0x58   : > { %p2234_p4 = por %p54_p2, %p53_p1  ;;  %p39_p10 = scmp.ge.s32.totalorder %s2863_s22, 2 }
  0x59   : > { %p2837_p6 = scmp.ne.s32.totalorder %s2827_s16, 0  ;;  %p1694_p11 = scmp.lt.s32.totalorder %s2029_s12, 8 }
  0x5a   : > { %s299_s14 = sand.u32 1, %s2009_s29   ;;  %s2865_s22 = smov (%p39_p10, %s2863_s22), 0 }
  0x5b   : > { %p2240_p8 = por %p2837_p6, %p53_p1  ;;  %2839 = sst [smem:[#allocation18_spill]] %s2865_s22 }
  0x5c   : > { %s1661_s20 = smul.u32 20, %s299_s14  ;;  %s41_s23 = ssub.s32 %s2025_s11, %s2865_s22 }
  0x5d   : > { %s1662_s21 = smul.u32 5, %s2021_s10  ;;  %s43_s6 = sor.u32 %s42_s18, %s41_s23 }
  0x5e   : > { %p44_p13 = scmp.eq.s32.totalorder %s43_s6, 0  ;;  %s1663_s8 = smul.u32 20, %s2025_s11 }
  0x5f   : > { %s303_s25 = scalar_lea.vmem [#allocation3], %s1661_s20  ;;  %p2254_p0 = pnand %p1694_p11, %p2234_p4 }
  0x60   : > { %s312_s26 = sshll.u32 %s303_s25, 4  ;;  %s309_s7 = sadd.s32 %s1663_s8, %s1662_s21  ;;  %s2261_s26 = int_to_ptr.vmem [resolvable:$true] %s312_s26 }
  0x61   : > { %s2259_s5 = scalar_select %p44_p13, %s2009_s29, %s46_s27  }
  0x62   : > { %s1497_s9 = sshll.u32 %s309_s7, 6  ;;  %s2268_s25 = scalar_lea.sflag [#allocation4], %s299_s14 }
  0x63   : > { %s2266_s18 = scalar_lea.hbm %s2798_s0, %s1497_s9  ;;  %p1895_p5 = pneg %p2254_p0 }
  0x64   : > { %s1893_s13 = scalar_lea.hbm %s2266_s18, 320  ;;  %s1898_s10 = scalar_lea.hbm %s2798_s0, 2560 }
  0x65   : > { %p1894_p3 = scmp.ne.s32.totalorder %s2266_s18, %s1893_s13  ;;  %p1899_p12 = scmp.lt.u32.totalorder %s2266_s18, %s2798_s0 }
  0x66   : > { %p1900_p1 = scmp.lt.u32.totalorder %s1898_s10, %s1893_s13  ;;  %p1902_p4 = scmp.lt.u32.totalorder %s1893_s13, %s2266_s18 }
  0x67   : > { %p1896_p7 = pnand %p1895_p5, %p1894_p3 }
  0x68   : > { %p1901_p2 = por %p1900_p1, %p1899_p12 }
  0x69   : > { %p1897_p9 = pneg %p1896_p7 }
  0x6a   : > { %p1903_p10 = por %p1902_p4, %p1901_p2 }
  0x6c   : > { %p1904_p6 = pnand %p1903_p10, %p1897_p9 }
  0x6e   : > { %1907 = shalt.err (!%p1904_p6)
}
  0x6f   : > { %s1908_s14 = scalar_lea.vmem %s2261_s26, 320  ;;  %s2039_s20 = smov [#allocation3]  }
  0x70   : > { %p1909_p11 = scmp.ne.s32.totalorder %s2261_s26, %s1908_s14  ;;  %s1913_s23 = sshll.u32 %s2039_s20, 4  ;;  %s1914_s23 = int_to_ptr.vmem [resolvable:$false] %s1913_s23 }
  0x71   : > { %s1915_s21 = scalar_lea.vmem %s1914_s23, 640  ;;  %p1916_p7 = scmp.lt.s32.totalorder %s2261_s26, %s1914_s23 }
  0x72   : > { %p1911_p13 = pnand %p1909_p11, %p1895_p5  ;;  %p1917_p12 = scmp.lt.s32.totalorder %s1915_s21, %s1908_s14 }
  0x74   : > { %p1912_p3 = pneg %p1911_p13  ;;  %p1918_p1 = por %p1917_p12, %p1916_p7 }
  0x76   : > { %p1919_p2 = pnand %p1918_p1, %p1912_p3 }
  0x78   : > { %1922 = shalt.err (!%p1919_p2)
}
  0x79   : > { %s2841_s6 = smov 4   ;;  %s2842_s8 = smov 64  }
  0x7a   : > { %1687 = dma.hbm_to_vmem [thread:$0]  (!%p2254_p0), %s2266_s18, 320, %s2261_s26, %s2268_s25, %s2842_s8, %s2842_s8, %s2841_s6  }
  0x7b   : > { %p2843_p5 = scmp.ne.s32.totalorder %s2831_s19, 0 }
  0x7c   : > { %s2302_s13 = sand.u32 (!%p2843_p5), 1, %s2005_s28   ;;  %p2844_p9 = scmp.ne.s32.totalorder (!%p2843_p5), %s2828_s17, 0 }
  0x7d   : > { %324 = sbr.rel (%p2843_p5) target bundleno = 1433 (0x599), region = 52  ;;  %s327_s27 = scalar_lea.sflag (!%p2843_p5), [#allocation4], %s2302_s13 }
  0x7e   : > { %s1664_s7 = smul.u32 (!%p2843_p5), 20, %s2302_s13 }
  0x80   : > { %s2306_s10 = scalar_lea.vmem (!%p2843_p5), [#allocation3], %s1664_s7 }
  0x84   : > { %1988 = dma.done.wait (%p2844_p9), %s327_s27, 320  }
  0x85   : > { %1990 = vsyncadd (%p2844_p9), %s327_s27, 4294966976  ;;  %p2845_p0 = scmp.ne.s32.totalorder %s2826_s15, 0 }
  0x87   : > { %1992 = dma.done.wait (%p2845_p0), [#allocation7], 8192  }
  0x88   : > { %1994 = vsyncadd (%p2845_p0), [#allocation7], 4294959104  ;;  %s1501_s19 = sshll.u32 %s2302_s13, 4  ;;  %v2040_v0 = vmov 0.0   ;;  %vm2041_vm0 = vmmov 0   ;;  %v1780_v1 = vld [vmem:[%s2799_s1] sm:$0xff]   ;;  %v586_v59 = vlaneseq }
  0x89   : > { %1577 = vmatprep.subr.bf16.mxu0 %v2040_v0  ;;  %618 = vst [vmem:[#allocation2] sm:$0xff] %v2040_v0  ;;  %1653 = vmatprep.subr.bf16.mxu1 %v2040_v0  ;;  %v1781_v2 = vld [vmem:[%s2799_s1 + $0x8] sm:$0xff]   ;;  %v1782_v3 = vld [vmem:[%s2799_s1 + $0x10] sm:$0xff]   ;;  %v1783_v4 = vld [vmem:[%s2799_s1 + $0x18] ss:$0 sps:$4 sm:$0xff]   ;;  %vm435_vm1 = vcmask 1043456  }
  0x8a   : > { %1585 = vmatprep.mubr.msk.bf16.mxu0 %vm2041_vm0, %v2040_v0  ;;  %1589 = vmatprep.mubr.msk.bf16.mxu1 %vm2041_vm0, %v2040_v0  ;;  %v437_v5 = vsel %vm435_vm1, %v1783_v4, 0  ;;  %v1784_v6 = vld [vmem:[%s2306_s10] sm:$0xff]   ;;  %v1785_v7 = vld [vmem:[%s2306_s10 + $0x8] sm:$0xff]   ;;  %vm425_vm2 = vcmask 457728   ;;  %v1786_v8 = vld [vmem:[%s2306_s10 + $0x10] ss:$0 sps:$4 sm:$0xff]  }
  0x8b   : > { %1578 = vmatpush3.bf16.msra.mxu0 %v1780_v1  ;;  %1657 = vmatpush3.bf16.msra.mxu1 %v1780_v1  ;;  %v1503_v9 = vld [vmem:[%s2800_s2] ss:$0 sm:$0xff]  ;;  %s1502_s23 = sshll.u32 %s2013_s30, 4  ;;  %s2425_s10 = scalar_lea.vmem [#allocation9], %s1501_s19 }
  0x8c   : > { %1579 = vmatprep.subr.bf16.mxu0 %v2040_v0  ;;  %1654 = vmatprep.subr.bf16.mxu1 %v2040_v0  ;;  %s1516_s21 = sadd.s32 4294967272, %s1502_s23  ;;  %s2427_s26 = smov 0  }
  0x8f   : > { %1580 = vmatpush3.bf16.msra.mxu0 %v1781_v2  ;;  %1658 = vmatpush3.bf16.msra.mxu1 %v1781_v2 }
  0x90   : > { %1581 = vmatprep.subr.bf16.mxu0 %v2040_v0  ;;  %1655 = vmatprep.subr.bf16.mxu1 %v2040_v0 }
  0x93   : > { %1582 = vmatpush3.bf16.msra.mxu0 %v1782_v3  ;;  %1659 = vmatpush3.bf16.msra.mxu1 %v1782_v3 }
  0x94   : > { %1583 = vmatprep.subr.bf16.mxu0 %v2040_v0  ;;  %1656 = vmatprep.subr.bf16.mxu1 %v2040_v0 }
  0x97   : > { %1584 = vmatpush3.bf16.msra.mxu0 %v437_v5  ;;  %1660 = vmatpush3.bf16.msra.mxu1 %v437_v5  ;;  %v2377_v5 = vshrl.u32 %v586_v59, 7 }
  0x9a   : > { %1586 = vmatmul.mubr.msk.bf16.vlgmr.msra.gmra.mrb[0].mxu0 %vm425_vm2, %v1784_v6  ;;  %1590 = vmatmul.mubr.msk.bf16.vlgmr.msra.gmra.mrb[0].mxu1 %vm425_vm2, %v1785_v7 }
  0x9b   : > { %1593 = vmatprep.mubr.msk.bf16.mxu1 %vm2041_vm0, %v2040_v0 }
  0xa2   : > { %1594 = vmatmul.mubr.msk.bf16.gmra.mrb[4].mxu1 %vm425_vm2, %v1786_v8 }
 0x16d   : > { %v473_v10 = vpop.f32.mrb[0].mxu0  ;;  %v481_v11 = vpop.f32.mrb[0].mxu1 }
 0x16e   : > { %v2339_v12 = vadd.f32 %v1503_v9, %v473_v10  ;;  %v2341_v13 = vadd.f32 %v1503_v9, %v481_v11  ;;  %v1587_v14 = vpop.f32.mrb[1].mxu0  ;;  %v1591_v15 = vpop.f32.mrb[1].mxu1  ;;  %v592_v10 = vstv %s1516_s21  ;;  %v588_v11 = vadd.s32 8, %v2377_v5 }
 0x16f   : > { %v476_v16 = vpop.f32.mrb[2].mxu0  ;;  %v484_v17 = vpop.f32.mrb[2].mxu1 }
 0x170   : > { %501 = vadd.xlane.f32.xlu1 %v2341_v13  ;;  %v1592_v18 = vpop.f32.mrb[3].mxu1  ;;  %497 = vadd.xlane.f32.xlu0 %v2339_v12  ;;  %v1588_v19 = vpop.f32.mrb[3].mxu0  ;;  %v2345_v20 = vadd.f32 %v1503_v9, %v476_v16  ;;  %v2347_v21 = vadd.f32 %v1503_v9, %v484_v17  ;;  %v512_v24 = vmul.f32 %v2339_v12, %v2339_v12  ;;  %v1514_v17 = vld [vmem:[%s2800_s2 + $0x1] ss:$0 sm:$0xff] }
 0x171   : > { %v514_v29 = vmul.f32 %v2341_v13, %v2341_v13  ;;  %v2386_v18 = vadd.s32 %v592_v10, %v2377_v5  ;;  %v589_v19 = vadd.s32 16, %v2377_v5 }
 0x172   : > { %v513_v25 = vmul.f32 %v2345_v20, %v2345_v20  ;;  %v515_v31 = vmul.f32 %v2347_v21, %v2347_v21 }
 0x173   : > { %vm598_vm3 = vcmp.ge.s32.totalorder %v2386_v18, 0 }
 0x174   : > { %503 = vadd.xlane.f32.xlu1 %v2347_v21  ;;  %499 = vadd.xlane.f32.xlu0 %v2345_v20 }
 0x175   : > { %v489_v22 = vpop.f32.mrb[4].mxu1 }
 0x176   : > { %v1595_v23 = vpop.f32.mrb[5].mxu1  ;;  %v2355_v27 = vadd.f32 %v1503_v9, %v489_v22 }
 0x177   : > { %v492_v26 = vpop.f32.mrb[6].mxu1 }
 0x178   : > { %517 = vadd.xlane.f32.xlu1 %v512_v24  ;;  %519 = vadd.xlane.f32.xlu0 %v513_v25  ;;  %v1596_v28 = vpop.f32.mrb[7].mxu1  ;;  %v516_v30 = vmul.f32 %v2355_v27, %v2355_v27  ;;  %v2389_v24 = vadd.s32 %v592_v10, %v588_v11 }
 0x17a   : > { %vm599_vm4 = vcmp.ge.s32.totalorder %v2389_v24, 0 }
 0x17c   : > { %521 = vadd.xlane.f32.xlu1 %v514_v29  ;;  %505 = vadd.xlane.f32.xlu0 %v2355_v27 }
 0x180   : > { %525 = vadd.xlane.f32.xlu1 %v516_v30  ;;  %523 = vadd.xlane.f32.xlu0 %v515_v31  ;;  %v2397_v30 = vadd.s32 %v592_v10, %v589_v19  ;;  %v591_v31 = vadd.s32 32, %v2377_v5 }
 0x182   : > { %vm600_vm5 = vcmp.ge.s32.totalorder %v2397_v30, 0 }
 0x1fd   : > { %v502_v32 = vpop.xlane.xlu1 %501  ;;  %v498_v33 = vpop.xlane.xlu0 %497 }
 0x1fe   : > { %v507_v36 = vmul.f32 0.03125, %v498_v33  ;;  %v2364_v38 = vmul.f32 0.03125, %v502_v32 }
 0x200   : > { %v532_v41 = vmul.f32 %v507_v36, %v507_v36  ;;  %v534_v47 = vmul.f32 %v2364_v38, %v2364_v38  ;;  %v547_v14 = vsub.f32 %v2339_v12, %v507_v36  ;;  %v1515_v12 = vld [vmem:[%s2800_s2 + $0x2] ss:$0 sm:$0xff] }
 0x201   : > { %v504_v34 = vpop.xlane.xlu1 %503  ;;  %v500_v35 = vpop.xlane.xlu0 %499 }
 0x202   : > { %v508_v37 = vmul.f32 0.03125, %v500_v35  ;;  %v2368_v48 = vmul.f32 0.03125, %v504_v34  ;;  %v590_v34 = vadd.s32 24, %v2377_v5 }
 0x204   : > { %v533_v42 = vmul.f32 %v508_v37, %v508_v37  ;;  %v535_v58 = vmul.f32 %v2368_v48, %v2368_v48  ;;  %v548_v16 = vsub.f32 %v2345_v20, %v508_v37  ;;  %v549_v20 = vsub.f32 %v2341_v13, %v2364_v38 }
 0x205   : > { %v518_v39 = vpop.xlane.xlu1 %517  ;;  %v520_v40 = vpop.xlane.xlu0 %519 }
 0x206   : > { %v527_v43 = vmul.f32 0.03125, %v518_v39  ;;  %v528_v44 = vmul.f32 0.03125, %v520_v40  ;;  %v550_v39 = vsub.f32 %v2347_v21, %v2368_v48 }
 0x208   : > { %v537_v45 = vsub.f32 %v527_v43, %v532_v41  ;;  %v538_v46 = vsub.f32 %v528_v44, %v533_v42  ;;  %v2411_v41 = vadd.s32 %v592_v10, %v591_v31 }
 0x209   : > { %v522_v49 = vpop.xlane.xlu1 %521  ;;  %v506_v50 = vpop.xlane.xlu0 %505 }
 0x20a   : > { %v542_v51 = vmax.f32 %v537_v45, 0.0  ;;  %v543_v52 = vmax.f32 %v538_v46, 0.0  ;;  %v529_v53 = vmul.f32 0.03125, %v522_v49  ;;  %v2370_v54 = vmul.f32 0.03125, %v506_v50 }
 0x20b   : > { %v2413_v45 = vadd.s32 %v592_v10, %v590_v34  ;;  %vm602_vm6 = vcmp.ge.s32.totalorder %v2411_v41, 0 }
 0x20c   : > { %v552_v55 = vadd.f32 1e-05, %v542_v51  ;;  %v553_v56 = vadd.f32 1e-05, %v543_v52  ;;  %v539_v57 = vsub.f32 %v529_v53, %v534_v47  ;;  %v536_v60 = vmul.f32 %v2370_v54, %v2370_v54 }
 0x20d   : > { %v526_v61 = vpop.xlane.xlu1 %525  ;;  %v524_v62 = vpop.xlane.xlu0 %523  ;;  %v551_v37 = vsub.f32 %v2355_v27, %v2370_v54  ;;  %vm601_vm7 = vcmp.ge.s32.totalorder %v2413_v45, 0 }
 0x20e   : > { %1787 = vrsqrt.f32 %v552_v55  ;;  %v544_v63 = vmax.f32 %v539_v57, 0.0  ;;  %v531_v0 = vmul.f32 0.03125, %v526_v61  ;;  %v530_v1 = vmul.f32 0.03125, %v524_v62 }
 0x20f   : > { %1789 = vrsqrt.f32 %v553_v56 }
 0x210   : > { %v554_v2 = vadd.f32 1e-05, %v544_v63  ;;  %v541_v3 = vsub.f32 %v531_v0, %v536_v60  ;;  %v540_v4 = vsub.f32 %v530_v1, %v535_v58 }
 0x212   : > { %1791 = vrsqrt.f32 %v554_v2  ;;  %v546_v6 = vmax.f32 %v541_v3, 0.0  ;;  %v545_v7 = vmax.f32 %v540_v4, 0.0 }
 0x214   : > { %v556_v8 = vadd.f32 1e-05, %v546_v6  ;;  %v555_v9 = vadd.f32 1e-05, %v545_v7 }
 0x216   : > { %1793 = vrsqrt.f32 %v556_v8 }
 0x217   : > { %1795 = vrsqrt.f32 %v555_v9 }
 0x218   : > { %v1788_v15 = vpop.eup %1787 }
 0x219   : > { %v1790_v22 = vpop.eup %1789  ;;  %v562_v23 = vmul.f32 %v1788_v15, %v547_v14 }
 0x21a   : > { %v563_v25 = vmul.f32 %v1790_v22, %v548_v16 }
 0x21b   : > { %v571_v26 = vmul.f32 %v1514_v17, %v562_v23 }
 0x21c   : > { %v1792_v28 = vpop.eup %1791  ;;  %v572_v29 = vmul.f32 %v1514_v17, %v563_v25 }
 0x21d   : > { %v580_v32 = vadd.f32 %v1515_v12, %v571_v26  ;;  %v564_v33 = vmul.f32 %v1792_v28, %v549_v20 }
 0x21e   : > { %v581_v35 = vadd.f32 %v1515_v12, %v572_v29 }
 0x21f   : > { %v613_v36 = vsel %vm598_vm3, %v580_v32, 0.0  ;;  %v573_v13 = vmul.f32 %v1514_v17, %v564_v33 }
 0x220   : > { %v1794_v38 = vpop.eup %1793  ;;  %619 = vst [vmem:[#allocation2 + $0x8] sm:$0xff] %v613_v36  ;;  %v614_v40 = vsel %vm599_vm4, %v581_v35, 0.0 }
 0x221   : > { %v1796_v42 = vpop.eup %1795  ;;  %620 = vst [vmem:[#allocation2 + $0x10] sm:$0xff] %v614_v40  ;;  %v582_v43 = vadd.f32 %v1515_v12, %v573_v13  ;;  %v566_v44 = vmul.f32 %v1794_v38, %v551_v37 }
 0x222   : > { %v565_v27 = vmul.f32 %v1796_v42, %v550_v39 }
 0x223   : > { %v615_v46 = vsel %vm600_vm5, %v582_v43, 0.0  ;;  %v575_v21 = vmul.f32 %v1514_v17, %v566_v44 }
 0x224   : > { %621 = vst [vmem:[#allocation2 + $0x18] sm:$0xff] %v615_v46  ;;  %v574_v47 = vmul.f32 %v1514_v17, %v565_v27 }
 0x225   : > { %v584_v48 = vadd.f32 %v1515_v12, %v575_v21 }
 0x226   : > { %v583_v49 = vadd.f32 %v1515_v12, %v574_v47 }
 0x227   : > { %v617_v50 = vsel %vm602_vm6, %v584_v48, 0.0 }
 0x228   : > { %623 = vst [vmem:[#allocation2 + $0x28] sm:$0xff] %v617_v50  ;;  %v616_v51 = vsel %vm601_vm7, %v583_v49, 0.0 }
 0x229   : > { %622 = vst [vmem:[#allocation2 + $0x20] sm:$0xff] %v616_v51 }
 0x22a LB: >> { %v643_v52 = vsub.s32 6, %v2377_v5  ;;  %v652_v53 = vsub.s32 0, %v2377_v5  ;;  %v690_v54 = vsub.s32 1, %v2377_v5  ;;  %v728_v55 = vsub.s32 2, %v2377_v5  ;;  %s1517_s19 = sshll.u32 %s2033_s26, 3  ;;  %s1546_s17 = sshll.u32 %s2033_s26, 6  ;;  %s2033_s26 = sphi %s2427_s26, %s629_s26  }
 0x22b   : >> { %v765_v56 = vsub.s32 3, %v2377_v5  ;;  %v803_v57 = vsub.s32 4, %v2377_v5  ;;  %v841_v58 = vsub.s32 5, %v2377_v5  ;;  %v630_v59 = vld [vmem:[#allocation2] sm:$0xff]  ;;  %v2441_v60 = vld [vmem:[#allocation2 + $0x8] sm:$0xff]  ;;  %s637_s18 = scalar_lea.vmem %s2801_s3, %s1517_s19  ;;  %vm666_vm8 = vcmask 1045504   ;;  %s639_s14 = scalar_lea.vmem %s2802_s4, %s1517_s19 }
 0x22c   : >> { %v638_v61 = vld [vmem:[%s637_s18] sm:$0x7f]  ;;  %vm704_vm9 = vcmask 1044480   ;;  %vm779_vm10 = vcmask 1042432   ;;  %s2464_s25 = scalar_lea.vmem [#allocation6], %s1546_s17  ;;  %vm817_vm11 = vcmask 1041408  }
 0x22d   : >> { %v2448_v62 = vrot.slane %v638_v61, %v643_v52  ;;  %v2452_v63 = vrot.slane %v638_v61, %v652_v53  ;;  %v2456_v0 = vrot.slane %v638_v61, %v690_v54  ;;  %v2460_v1 = vrot.slane %v638_v61, %v728_v55  ;;  %v2490_v23 = vld [vmem:[#allocation2 + $0x10] sm:$0xff]  ;;  %s2505_s20 = scalar_lea.vmem [#allocation8], %s1546_s17  ;;  %v2507_v36 = vld [vmem:[%s639_s14] sm:$0x1f]  ;;  %s2846_s6 = sld [smem:[#allocation20_spill]] }
 0x22e   : >> { %v2468_v2 = vrot.slane %v638_v61, %v765_v56  ;;  %v2472_v3 = vrot.slane %v638_v61, %v803_v57  ;;  %v2474_v4 = vrot.slane %v638_v61, %v841_v58  ;;  %vm855_vm12 = vcmask 1040384  }
 0x22f   : >> { %v645_v6 = vmul.f32 %v2448_v62, %v2441_v60  ;;  %v654_v7 = vmul.f32 %v2452_v63, %v630_v59  ;;  %v655_v8 = vmul.f32 %v2452_v63, %v2441_v60  ;;  %v692_v9 = vmul.f32 %v2456_v0, %v630_v59 }
 0x230   : >> { %v693_v10 = vmul.f32 %v2456_v0, %v2441_v60  ;;  %v730_v11 = vmul.f32 %v2460_v1, %v630_v59  ;;  %v731_v14 = vmul.f32 %v2460_v1, %v2441_v60  ;;  %v767_v15 = vmul.f32 %v2468_v2, %v630_v59 }
 0x231   : >> { %v667_v16 = vrot.slane %v654_v7, 2  ;;  %v668_v17 = vrot.slane %v655_v8, 2  ;;  %v705_v19 = vrot.slane %v692_v9, 3  ;;  %v768_v22 = vmul.f32 %v2468_v2, %v2441_v60 }
 0x232   : >> { %v706_v12 = vrot.slane %v693_v10, 3  ;;  %v742_v25 = vrot.slane %v730_v11, 4  ;;  %v743_v20 = vrot.slane %v731_v14, 4  ;;  %v780_v26 = vrot.slane %v767_v15, 5  ;;  %v2536_v10 = vld [vmem:[#allocation2 + $0x18] sm:$0xff] }
 0x233   : >> { %v669_v28 = vsel %vm666_vm8, %v667_v16, %v668_v17  ;;  %v781_v29 = vrot.slane %v768_v22, 5  ;;  %v805_v31 = vmul.f32 %v2472_v3, %v630_v59  ;;  %v806_v32 = vmul.f32 %v2472_v3, %v2441_v60  ;;  %s996_s8 = scalar_lea.vmem %s2846_s6, %s2033_s26  ;;  %s629_s26 = sadd.s32 1, %s2033_s26  }
 0x234   : >> { %v683_v33 = vadd.f32 %v669_v28, %v645_v6  ;;  %v707_v34 = vsel %vm704_vm9, %v705_v19, %v706_v12  ;;  %v843_v35 = vmul.f32 %v2474_v4, %v630_v59  ;;  %v744_v13 = vsel %vm435_vm1, %v742_v25, %v743_v20  ;;  %p626_p4 = scmp.ge.s32.totalorder %s629_s26, 4  }
 0x235   : >> { %v818_v37 = vrot.slane %v805_v31, 6  ;;  %v819_v38 = vrot.slane %v806_v32, 6  ;;  %v844_v39 = vmul.f32 %v2474_v4, %v2441_v60  ;;  %v782_v42 = vsel %vm779_vm10, %v780_v26, %v781_v29  ;;  %s2847_s7 = sld [smem:[#allocation14_spill]] (%p626_p4)  ;;  %s1541_s27 = sshll.u32 (%p626_p4), %s2013_s30, 1 }
 0x236   : >> { %v721_v40 = vadd.f32 %v707_v34, %v683_v33  ;;  %v856_v43 = vrot.slane %v843_v35, 7  ;;  %v656_v44 = vmul.f32 %v2452_v63, %v2490_v23  ;;  %v646_v46 = vmul.f32 %v2448_v62, %v2490_v23  ;;  %s2848_s14 = sld [smem:[#allocation22_spill]] (%p626_p4)  ;;  %s1353_s23 = scalar_lea.sflag (%p626_p4), [#allocation5], %s2302_s13 }
 0x237   : >> { %v857_v27 = vrot.slane %v844_v39, 7  ;;  %v694_v21 = vmul.f32 %v2456_v0, %v2490_v23  ;;  %v732_v47 = vmul.f32 %v2460_v1, %v2490_v23  ;;  %v769_v50 = vmul.f32 %v2468_v2, %v2490_v23  ;;  %s2044_s6 = smov (%p626_p4), [#allocation9]  }
 0x238   : >> { %v758_v48 = vadd.f32 %v744_v13, %v721_v40  ;;  %v670_v49 = vrot.slane %v656_v44, 2  ;;  %v2525_v51 = vmul.f32 %v2472_v3, %v2490_v23  ;;  %v820_v52 = vsel %vm817_vm11, %v818_v37, %v819_v38 }
 0x239   : >> { %v708_v58 = vrot.slane %v694_v21, 3  ;;  %v745_v59 = vrot.slane %v732_v47, 4  ;;  %v845_v61 = vmul.f32 %v2474_v4, %v2490_v23  ;;  %v2533_v7 = vrot.slane %v2507_v36, %v652_v53  ;;  %v2568_v47 = vld [vmem:[#allocation2 + $0x20] sm:$0xff] }
 0x23a   : >> { %v796_v6 = vadd.f32 %v782_v42, %v758_v48  ;;  %v671_v8 = vsel %vm666_vm8, %v668_v17, %v670_v49  ;;  %v783_v9 = vrot.slane %v769_v50, 5  ;;  %v858_v11 = vsel %vm855_vm12, %v856_v43, %v857_v27 }
 0x23b   : >> { %v684_v14 = vadd.f32 %v671_v8, %v646_v46  ;;  %v709_v15 = vsel %vm704_vm9, %v706_v12, %v708_v58  ;;  %v821_v16 = vrot.slane %v2525_v51, 6  ;;  %v746_v22 = vsel %vm435_vm1, %v743_v20, %v745_v59  ;;  %s1542_s26 = sshll.u32 (%p626_p4), %s2847_s7, 3 }
 0x23c   : >> { %v834_v19 = vadd.f32 %v820_v52, %v796_v6  ;;  %v784_v25 = vsel %vm779_vm10, %v781_v29, %v783_v9  ;;  %v859_v26 = vrot.slane %v845_v61, 7  ;;  %v647_v17 = vmul.f32 %v2448_v62, %v2536_v10  ;;  %s1365_s18 = sadd.s32 (%p626_p4), %s1542_s26, %s1541_s27 }
 0x23d   : >> { %v722_v53 = vadd.f32 %v709_v15, %v684_v14  ;;  %v657_v28 = vmul.f32 %v2452_v63, %v2536_v10  ;;  %v695_v31 = vmul.f32 %v2456_v0, %v2536_v10  ;;  %v733_v12 = vmul.f32 %v2460_v1, %v2536_v10  ;;  %s1543_s30 = sshll.u32 (%p626_p4), %s1365_s18, 7 }
 0x23e   : >> { %v872_v32 = vadd.f32 %v858_v11, %v834_v19  ;;  %v770_v20 = vmul.f32 %v2468_v2, %v2536_v10  ;;  %v2555_v29 = vmul.f32 %v2472_v3, %v2536_v10  ;;  %v2559_v13 = vmul.f32 %v2474_v4, %v2536_v10 }
 0x23f   : >> { %v759_v33 = vadd.f32 %v746_v22, %v722_v53  ;;  %v672_v34 = vrot.slane %v657_v28, 2  ;;  %v710_v35 = vrot.slane %v695_v31, 3  ;;  %v822_v39 = vsel %vm817_vm11, %v819_v38, %v821_v16 }
 0x240   : >> { %v2562_v37 = vadd.f32 %v2533_v7, %v872_v32  ;;  %v747_v40 = vrot.slane %v733_v12, 4  ;;  %v785_v42 = vrot.slane %v770_v20, 5  ;;  %v860_v44 = vsel %vm855_vm12, %v857_v27, %v859_v26  ;;  %v2596_v32 = vld [vmem:[#allocation2 + $0x28] sm:$0xff] }
 0x241   : >> { %v797_v43 = vadd.f32 %v784_v25, %v759_v33  ;;  %v673_v46 = vsel %vm666_vm8, %v670_v49, %v672_v34  ;;  %v711_v21 = vsel %vm704_vm9, %v708_v58, %v710_v35  ;;  %v823_v51 = vrot.slane %v2555_v29, 6 }
 0x242   : >> { %886 = vadd.xlane.f32.xlu0 %v2562_v37  ;;  %v901_v48 = vmul.f32 %v2562_v37, %v2562_v37  ;;  %v685_v50 = vadd.f32 %v673_v46, %v647_v17  ;;  %v861_v38 = vrot.slane %v2559_v13, 7  ;;  %v748_v61 = vsel %vm435_vm1, %v745_v59, %v747_v40 }
 0x243   : >> { %v835_v52 = vadd.f32 %v822_v39, %v797_v43  ;;  %v786_v27 = vsel %vm779_vm10, %v783_v9, %v785_v42  ;;  %v648_v49 = vmul.f32 %v2448_v62, %v2568_v47  ;;  %v658_v6 = vmul.f32 %v2452_v63, %v2568_v47 }
 0x244   : >> { %906 = vadd.xlane.f32.xlu1 %v901_v48  ;;  %v723_v58 = vadd.f32 %v711_v21, %v685_v50  ;;  %v696_v8 = vmul.f32 %v2456_v0, %v2568_v47  ;;  %v734_v11 = vmul.f32 %v2460_v1, %v2568_v47  ;;  %v771_v59 = vmul.f32 %v2468_v2, %v2568_v47 }
 0x245   : >> { %v873_v14 = vadd.f32 %v860_v44, %v835_v52  ;;  %v809_v9 = vmul.f32 %v2472_v3, %v2568_v47  ;;  %v847_v15 = vmul.f32 %v2474_v4, %v2568_v47  ;;  %v674_v22 = vrot.slane %v658_v6, 2 }
 0x246   : >> { %v760_v19 = vadd.f32 %v748_v61, %v723_v58  ;;  %v712_v25 = vrot.slane %v696_v8, 3  ;;  %v749_v53 = vrot.slane %v734_v11, 4  ;;  %v824_v28 = vsel %vm817_vm11, %v821_v16, %v823_v51 }
 0x247   : >> { %v2592_v17 = vadd.f32 %v2533_v7, %v873_v14  ;;  %v862_v31 = vsel %vm855_vm12, %v859_v26, %v861_v38  ;;  %v675_v20 = vsel %vm666_vm8, %v672_v34, %v674_v22  ;;  %v787_v33 = vrot.slane %v771_v59, 5 }
 0x248   : >> { %v798_v12 = vadd.f32 %v786_v27, %v760_v19  ;;  %v713_v29 = vsel %vm704_vm9, %v710_v35, %v712_v25  ;;  %v686_v39 = vadd.f32 %v675_v20, %v648_v49  ;;  %v825_v43 = vrot.slane %v809_v9, 6 }
 0x249   : >> { %888 = vadd.xlane.f32.xlu0 %v2592_v17  ;;  %v902_v13 = vmul.f32 %v2592_v17, %v2592_v17  ;;  %v863_v44 = vrot.slane %v847_v15, 7  ;;  %v750_v16 = vsel %vm435_vm1, %v747_v40, %v749_v53  ;;  %v649_v26 = vmul.f32 %v2448_v62, %v2596_v32 }
 0x24a   : >> { %v836_v46 = vadd.f32 %v824_v28, %v798_v12  ;;  %v659_v34 = vmul.f32 %v2452_v63, %v2596_v32  ;;  %v724_v35 = vadd.f32 %v713_v29, %v686_v39  ;;  %v697_v21 = vmul.f32 %v2456_v0, %v2596_v32 }
 0x24b   : >> { %908 = vadd.xlane.f32.xlu1 %v902_v13  ;;  %v735_v48 = vmul.f32 %v2460_v1, %v2596_v32  ;;  %v772_v50 = vmul.f32 %v2468_v2, %v2596_v32  ;;  %v788_v40 = vsel %vm779_vm10, %v785_v42, %v787_v33  ;;  %v810_v62 = vmul.f32 %v2472_v3, %v2596_v32  ;;  %v1797_v13 = vld [vmem:[%s2464_s25] sm:$0xff]  }
 0x24c   : >> { %v874_v52 = vadd.f32 %v862_v31, %v836_v46  ;;  %v676_v61 = vrot.slane %v659_v34, 2  ;;  %v761_v27 = vadd.f32 %v750_v16, %v724_v35  ;;  %v826_v63 = vsel %vm817_vm11, %v823_v51, %v825_v43  ;;  %v1799_v46 = vld [vmem:[%s2464_s25 + $0x10] sm:$0xff]   ;;  %v1801_v16 = vld [vmem:[%s2464_s25 + $0x20] sm:$0xff]   ;;  %v1804_v35 = vld [vmem:[%s2464_s25 + $0x38] sm:$0xff]  }
 0x24d   : >> { %v714_v49 = vrot.slane %v697_v21, 3  ;;  %v751_v58 = vrot.slane %v735_v48, 4  ;;  %v789_v6 = vrot.slane %v772_v50, 5  ;;  %v848_v2 = vmul.f32 %v2474_v4, %v2596_v32  ;;  %v1803_v34 = vld [vmem:[%s2464_s25 + $0x30] sm:$0xff]  }
 0x24e   : >> { %v2619_v0 = vadd.f32 %v2533_v7, %v874_v52  ;;  %v677_v1 = vsel %vm666_vm8, %v674_v22, %v676_v61  ;;  %v799_v8 = vadd.f32 %v788_v40, %v761_v27  ;;  %v864_v3 = vsel %vm855_vm12, %v861_v38, %v863_v44 }
 0x24f   : >> { %v687_v42 = vadd.f32 %v677_v1, %v649_v26  ;;  %v715_v11 = vsel %vm704_vm9, %v712_v25, %v714_v49  ;;  %v752_v14 = vsel %vm435_vm1, %v749_v53, %v751_v58  ;;  %v827_v59 = vrot.slane %v810_v62, 6  ;;  %v1802_v26 = vld [vmem:[%s2464_s25 + $0x28] sm:$0xff]  }
 0x250   : >> { %890 = vadd.xlane.f32.xlu0 %v2619_v0  ;;  %v903_v51 = vmul.f32 %v2619_v0, %v2619_v0  ;;  %v837_v9 = vadd.f32 %v826_v63, %v799_v8  ;;  %v790_v19 = vsel %vm779_vm10, %v787_v33, %v789_v6  ;;  %v865_v4 = vrot.slane %v848_v2, 7 }
 0x251   : >> { %v725_v15 = vadd.f32 %v715_v11, %v687_v42  ;;  %v2042_v31 = vmov 0.0   ;;  %v828_v38 = vsel %vm817_vm11, %v825_v43, %v827_v59  ;;  %vm2043_vm13 = vmmov 0  }
 0x252   : >> { %v875_v22 = vadd.f32 %v864_v3, %v837_v9  ;;  %1597 = vmatprep.subr.bf16.mxu0 %v2042_v31  ;;  %1625 = vmatprep.subr.bf16.mxu1 %v2042_v31  ;;  %v866_v12 = vsel %vm855_vm12, %v863_v44, %v865_v4  ;;  %v1798_v44 = vld [vmem:[%s2464_s25 + $0x8] sm:$0xff]  }
 0x253   : >> { %v762_v28 = vadd.f32 %v752_v14, %v725_v15  ;;  %1598 = vmatpush3.bf16.msra.mxu0 %v1797_v13  ;;  %1613 = vmatprep.mubr.msk.bf16.mxu0 %vm2043_vm13, %v2042_v31 }
 0x254   : >> { %910 = vadd.xlane.f32.xlu0 %v903_v51  ;;  %v2635_v25 = vadd.f32 %v2533_v7, %v875_v22  ;;  %1599 = vmatprep.subr.bf16.mxu0 %v2042_v31 }
 0x255   : >> { %v800_v53 = vadd.f32 %v790_v19, %v762_v28  ;;  %1641 = vmatprep.mubr.msk.bf16.mxu1 %vm2043_vm13, %v2042_v31 }
 0x256   : >> { %892 = vadd.xlane.f32.xlu1 %v2635_v25  ;;  %v904_v20 = vmul.f32 %v2635_v25, %v2635_v25 }
 0x257   : >> { %v838_v29 = vadd.f32 %v828_v38, %v800_v53  ;;  %1600 = vmatpush3.bf16.msra.mxu0 %v1798_v44 }
 0x258   : >> { %1601 = vmatprep.subr.bf16.mxu0 %v2042_v31 }
 0x259   : >> { %v876_v33 = vadd.f32 %v866_v12, %v838_v29 }
 0x25a   : >> { %912 = vadd.xlane.f32.xlu1 %v904_v20  ;;  %v959_v20 = vrot.slane %v2507_v36, %v690_v54 }
 0x25b   : >> { %v2643_v39 = vadd.f32 %v2533_v7, %v876_v33  ;;  %1602 = vmatpush3.bf16.msra.mxu0 %v1799_v46  ;;  %v1800_v7 = vld [vmem:[%s2464_s25 + $0x18] sm:$0xff]   ;;  %s1368_s25 = sshll.u32 (%p626_p4), %s2425_s10, 4  ;;  %s2743_s25 = int_to_ptr.vmem [resolvable:$true] %s1368_s25 }
 0x25c   : >> { %1603 = vmatprep.subr.bf16.mxu0 %v2042_v31  ;;  %s1923_s21 = scalar_lea.vmem (%p626_p4), %s2743_s25, 256 }
 0x25d   : >> { %894 = vadd.xlane.f32.xlu0 %v2643_v39  ;;  %v905_v43 = vmul.f32 %v2643_v39, %v2643_v39  ;;  %p1924_p10 = scmp.ne.s32.totalorder (%p626_p4), %s2743_s25, %s1923_s21 }
 0x25f   : >> { %914 = vadd.xlane.f32.xlu1 %v905_v43  ;;  %1604 = vmatpush3.bf16.msra.mxu0 %v1800_v7  ;;  %p1925_p6 = pnand (%p626_p4), %p1924_p10, %p2240_p8 }
 0x260   : >> { %1605 = vmatprep.subr.bf16.mxu0 %v2042_v31 }
 0x261   : > { %p1926_p11 = pneg (%p626_p4), %p1925_p6 }
 0x263   : >> { %1606 = vmatpush3.bf16.msra.mxu0 %v1801_v16 }
 0x264   : >> { %1607 = vmatprep.subr.bf16.mxu0 %v2042_v31 }
 0x267   : >> { %1608 = vmatpush3.bf16.msra.mxu0 %v1802_v26 }
 0x268   : >> { %1609 = vmatprep.subr.bf16.mxu0 %v2042_v31 }
 0x26b   : >> { %1610 = vmatpush3.bf16.msra.mxu0 %v1803_v34  ;;  %v968_v34 = vrot.slane %v2507_v36, %v728_v55 }
 0x26c   : >> { %1611 = vmatprep.subr.bf16.mxu0 %v2042_v31 }
 0x26f   : >> { %1612 = vmatpush3.bf16.msra.mxu0 %v1804_v35 }
 0x2cf   : >> { %v887_v21 = vpop.xlane.xlu0 %886 }
 0x2d0   : >> { %v896_v48 = vmul.f32 0.03125, %v887_v21 }
 0x2d1   : >> { %v907_v50 = vpop.xlane.xlu1 %906 }
 0x2d2   : >> { %v921_v52 = vmul.f32 %v896_v48, %v896_v48  ;;  %v916_v40 = vmul.f32 0.03125, %v907_v50  ;;  %v936_v22 = vsub.f32 %v2562_v37, %v896_v48 }
 0x2d4   : >> { %v926_v61 = vsub.f32 %v916_v40, %v921_v52 }
 0x2d6   : >> { %v931_v62 = vmax.f32 %v926_v61, 0.0  ;;  %v889_v27 = vpop.xlane.xlu0 %888 }
 0x2d7   : >> { %v897_v63 = vmul.f32 0.03125, %v889_v27 }
 0x2d8   : >> { %v941_v49 = vadd.f32 1e-05, %v931_v62  ;;  %v909_v58 = vpop.xlane.xlu1 %908 }
 0x2d9   : >> { %v922_v1 = vmul.f32 %v897_v63, %v897_v63  ;;  %v917_v6 = vmul.f32 0.03125, %v909_v58  ;;  %v937_v13 = vsub.f32 %v2592_v17, %v897_v63 }
 0x2da   : >> { %1813 = vrsqrt.f32 %v941_v49 }
 0x2db   : >> { %v927_v2 = vsub.f32 %v917_v6, %v922_v1 }
 0x2dd   : >> { %v932_v8 = vmax.f32 %v927_v2, 0.0  ;;  %v891_v42 = vpop.xlane.xlu0 %890 }
 0x2de   : >> { %v898_v11 = vmul.f32 0.03125, %v891_v42 }
 0x2df   : >> { %v942_v3 = vadd.f32 1e-05, %v932_v8 }
 0x2e0   : >> { %v923_v51 = vmul.f32 %v898_v11, %v898_v11  ;;  %v938_v55 = vsub.f32 %v2619_v0, %v898_v11  ;;  %v1805_v11 = vld [vmem:[%s2505_s20] sm:$0xff]  }
 0x2e1   : >> { %1815 = vrsqrt.f32 %v942_v3  ;;  %v911_v14 = vpop.xlane.xlu0 %910  ;;  %1626 = vmatpush3.bf16.msra.mxu1 %v1805_v11 }
 0x2e2   : >> { %v918_v59 = vmul.f32 0.03125, %v911_v14  ;;  %1627 = vmatprep.subr.bf16.mxu1 %v2042_v31 }
 0x2e3   : >> { %v893_v9 = vpop.xlane.xlu1 %892 }
 0x2e4   : >> { %v928_v15 = vsub.f32 %v918_v59, %v923_v51  ;;  %v1814_v19 = vpop.eup %1813  ;;  %v899_v4 = vmul.f32 0.03125, %v893_v9 }
 0x2e5   : >> { %v951_v12 = vmul.f32 %v1814_v19, %v936_v22  ;;  %v1807_v19 = vld [vmem:[%s2505_s20 + $0x10] sm:$0xff]   ;;  %v1809_v22 = vld [vmem:[%s2505_s20 + $0x20] sm:$0xff]  }
 0x2e6   : >> { %v933_v28 = vmax.f32 %v928_v15, 0.0  ;;  %v924_v29 = vmul.f32 %v899_v4, %v899_v4  ;;  %v939_v58 = vsub.f32 %v2635_v25, %v899_v4  ;;  %v1808_v4 = vld [vmem:[%s2505_s20 + $0x18] sm:$0xff]  }
 0x2e7   : >> { %v913_v53 = vpop.xlane.xlu1 %912  ;;  %v960_v37 = vmul.f32 %v959_v20, %v951_v12  ;;  %v1520_v12 = vld [vmem:[%s996_s8] ss:$0 sm:$0xff]  ;;  %s1927_s8 = sshll.u32 (%p626_p4), %s2044_s6, 4  ;;  %s1928_s8 = int_to_ptr.vmem [resolvable:$false] %s1927_s8 }
 0x2e8   : >> { %v943_v38 = vadd.f32 1e-05, %v933_v28  ;;  %v919_v33 = vmul.f32 0.03125, %v913_v53  ;;  %v1810_v28 = vld [vmem:[%s2505_s20 + $0x28] sm:$0xff]   ;;  %v1812_v53 = vld [vmem:[%s2505_s20 + $0x38] sm:$0xff]   ;;  %s1929_s7 = scalar_lea.vmem (%p626_p4), %s1928_s8, 512  ;;  %p1930_p13 = scmp.lt.s32.totalorder (%p626_p4), %s2743_s25, %s1928_s8 }
 0x2e9   : >> { %v969_v40 = vadd.f32 %v968_v34, %v960_v37  ;;  %p1931_p3 = scmp.lt.s32.totalorder (%p626_p4), %s1929_s7, %s1923_s21 }
 0x2ea   : >> { %v895_v43 = vpop.xlane.xlu0 %894  ;;  %1817 = vrsqrt.f32 %v943_v38  ;;  %v929_v46 = vsub.f32 %v919_v33, %v924_v29  ;;  %v1811_v38 = vld [vmem:[%s2505_s20 + $0x30] sm:$0xff]  }
 0x2eb   : >> { %v1816_v44 = vpop.eup %1815  ;;  %v900_v7 = vmul.f32 0.03125, %v895_v43  ;;  %p1932_p7 = por (%p626_p4), %p1931_p3, %p1930_p13 }
 0x2ec   : >> { %v915_v16 = vpop.xlane.xlu1 %914  ;;  %v952_v26 = vmul.f32 %v1816_v44, %v937_v13  ;;  %v934_v35 = vmax.f32 %v929_v46, 0.0 }
 0x2ed   : >> { %v925_v21 = vmul.f32 %v900_v7, %v900_v7  ;;  %v920_v48 = vmul.f32 0.03125, %v915_v16  ;;  %v940_v8 = vsub.f32 %v2643_v39, %v900_v7  ;;  %v1806_v39 = vld [vmem:[%s2505_s20 + $0x8] sm:$0xff]   ;;  %s2741_s20 = scalar_lea.hbm (%p626_p4), %s2848_s14, %s1543_s30  ;;  %p1933_p12 = pnand (%p626_p4), %p1932_p7, %p1926_p11 }
 0x2ee   : >> { %v961_v54 = vmul.f32 %v959_v20, %v952_v26  ;;  %v944_v50 = vadd.f32 1e-05, %v934_v35  ;;  %1628 = vmatpush3.bf16.msra.mxu1 %v1806_v39 }
 0x2ef   : >> { %v930_v52 = vsub.f32 %v920_v48, %v925_v21  ;;  %1629 = vmatprep.subr.bf16.mxu1 %v2042_v31 }
 0x2f0   : >> { %v970_v17 = vadd.f32 %v968_v34, %v961_v54  ;;  %1819 = vrsqrt.f32 %v944_v50 }
 0x2f1   : >> { %v935_v61 = vmax.f32 %v930_v52, 0.0 }
 0x2f2   : >> { %v974_v62 = vpack.c.bf16 %v970_v17, %v969_v40  ;;  %1630 = vmatpush3.bf16.msra.mxu1 %v1807_v19 }
 0x2f3   : >> { %v945_v27 = vadd.f32 1e-05, %v935_v61  ;;  %1631 = vmatprep.subr.bf16.mxu1 %v2042_v31 }
 0x2f4   : >> { %1614 = vmatmul.mubr.bf16.vlgmr.msra.gmra.mrb[0].mxu0 %v974_v62  ;;  %v1818_v63 = vpop.eup %1817 }
 0x2f5   : >> { %1821 = vrsqrt.f32 %v945_v27  ;;  %1617 = vmatprep.mubr.msk.bf16.mxu0 %vm2043_vm13, %v2042_v31  ;;  %v953_v49 = vmul.f32 %v1818_v63, %v938_v55 }
 0x2f6   : >> { %1632 = vmatpush3.bf16.msra.mxu1 %v1808_v4 }
 0x2f7   : >> { %v962_v2 = vmul.f32 %v959_v20, %v953_v49  ;;  %1633 = vmatprep.subr.bf16.mxu1 %v2042_v31 }
 0x2f9   : >> { %v971_v51 = vadd.f32 %v968_v34, %v962_v2 }
 0x2fa   : >> { %v1820_v1 = vpop.eup %1819  ;;  %1634 = vmatpush3.bf16.msra.mxu1 %v1809_v22 }
 0x2fb   : >> { %v954_v6 = vmul.f32 %v1820_v1, %v939_v58  ;;  %1635 = vmatprep.subr.bf16.mxu1 %v2042_v31 }
 0x2fd   : >> { %v963_v42 = vmul.f32 %v959_v20, %v954_v6 }
 0x2fe   : >> { %1636 = vmatpush3.bf16.msra.mxu1 %v1810_v28 }
 0x2ff   : >> { %v1822_v3 = vpop.eup %1821  ;;  %v972_v14 = vadd.f32 %v968_v34, %v963_v42  ;;  %1637 = vmatprep.subr.bf16.mxu1 %v2042_v31 }
 0x300   : >> { %v955_v59 = vmul.f32 %v1822_v3, %v940_v8 }
 0x301   : >> { %v975_v9 = vpack.c.bf16 %v972_v14, %v971_v51 }
 0x302   : >> { %v964_v15 = vmul.f32 %v959_v20, %v955_v59  ;;  %1638 = vmatpush3.bf16.msra.mxu1 %v1811_v38 }
 0x303   : >> { %1618 = vmatmul.mubr.bf16.gmra.mrb[4].mxu0 %v975_v9  ;;  %1639 = vmatprep.subr.bf16.mxu1 %v2042_v31 }
 0x304   : >> { %1621 = vmatprep.mubr.msk.bf16.mxu0 %vm2043_vm13, %v2042_v31  ;;  %v973_v0 = vadd.f32 %v968_v34, %v964_v15 }
 0x306   : >> { %v976_v25 = vpack.c.bf16 %v973_v0, %v973_v0  ;;  %1640 = vmatpush3.bf16.msra.mxu1 %v1812_v53 }
 0x30b   : >> { %1622 = vmatmul.mubr.bf16.gmra.mrb[8].mxu0 %v976_v25 }
 0x3c7   : >> { %v1086_v20 = vpop.f32.mrb[0].mxu0 }
 0x3c8   : >> { %v1087_v29 = vadd.f32 %v1520_v12, %v1086_v20  ;;  %v1615_v33 = vpop.f32.mrb[1].mxu0 }
 0x3c9   : >> { %v1089_v13 = vpop.f32.mrb[2].mxu0 }
 0x3ca   : >> { %v1113_v43 = vmul.f32 0.044715, %v1087_v29  ;;  %v1090_v44 = vadd.f32 %v1520_v12, %v1089_v13  ;;  %v1616_v46 = vpop.f32.mrb[3].mxu0  ;;  %v1108_v9 = vmul.f32 0.5, %v1087_v29 }
 0x3cc   : >> { %v1118_v7 = vmul.f32 %v1113_v43, %v1087_v29  ;;  %v1114_v16 = vmul.f32 0.044715, %v1090_v44  ;;  %v1109_v15 = vmul.f32 0.5, %v1090_v44 }
 0x3ce   : >> { %v1123_v26 = vmul.f32 %v1118_v7, %v1087_v29  ;;  %v1119_v37 = vmul.f32 %v1114_v16, %v1090_v44 }
 0x3d0   : >> { %v1124_v34 = vmul.f32 %v1119_v37, %v1090_v44  ;;  %v1128_v35 = vadd.f32 %v1123_v26, %v1087_v29 }
 0x3d2   : >> { %v1129_v21 = vadd.f32 %v1124_v34, %v1090_v44  ;;  %v1133_v48 = vmul.f32 0.7978846, %v1128_v35 }
 0x3d4   : >> { %v1134_v54 = vmul.f32 0.7978846, %v1129_v21  ;;  %1823 = vtanh.f32 %v1133_v48 }
 0x3d6   : >> { %1825 = vtanh.f32 %v1134_v54  ;;  %v1094_v50 = vpop.f32.mrb[4].mxu0 }
 0x3d7   : >> { %v1095_v52 = vadd.f32 %v1520_v12, %v1094_v50  ;;  %v1619_v40 = vpop.f32.mrb[5].mxu0  ;;  %v1177_v50 = vrot.slane %v2507_v36, %v765_v56 }
 0x3d8   : >> { %v1097_v17 = vpop.f32.mrb[6].mxu0 }
 0x3d9   : >> { %v1115_v61 = vmul.f32 0.044715, %v1095_v52  ;;  %v1098_v62 = vadd.f32 %v1520_v12, %v1097_v17  ;;  %v1620_v27 = vpop.f32.mrb[7].mxu0  ;;  %v1110_v44 = vmul.f32 0.5, %v1095_v52 }
 0x3db   : >> { %v1120_v63 = vmul.f32 %v1115_v61, %v1095_v52  ;;  %v1116_v55 = vmul.f32 0.044715, %v1098_v62  ;;  %v1111_v46 = vmul.f32 0.5, %v1098_v62 }
 0x3dd   : >> { %v1125_v58 = vmul.f32 %v1120_v63, %v1095_v52  ;;  %v1121_v1 = vmul.f32 %v1116_v55, %v1098_v62 }
 0x3de   : >> { %v1824_v49 = vpop.eup %1823  ;;  %v1102_v6 = vpop.f32.mrb[8].mxu0 }
 0x3df   : >> { %v1143_v2 = vadd.f32 1.0, %v1824_v49  ;;  %v1126_v42 = vmul.f32 %v1121_v1, %v1098_v62  ;;  %v1103_v3 = vadd.f32 %v1520_v12, %v1102_v6  ;;  %v1623_v51 = vpop.f32.mrb[9].mxu0  ;;  %v1130_v14 = vadd.f32 %v1125_v58, %v1095_v52 }
 0x3e0   : >> { %v1826_v8 = vpop.eup %1825  ;;  %v1105_v59 = vpop.f32.mrb[10].mxu0  ;;  %v1285_v52 = vrot.slane %v2507_v36, %v803_v57 }
 0x3e1   : >> { %v1144_v0 = vadd.f32 1.0, %v1826_v8  ;;  %v1117_v25 = vmul.f32 0.044715, %v1103_v3  ;;  %v1624_v11 = vpop.f32.mrb[11].mxu0  ;;  %v1131_v39 = vadd.f32 %v1126_v42, %v1098_v62  ;;  %v1135_v19 = vmul.f32 0.7978846, %v1130_v14 }
 0x3e2   : >> { %v1148_v4 = vmul.f32 %v1143_v2, %v1108_v9  ;;  %v1112_v35 = vmul.f32 0.5, %v1103_v3 }
 0x3e3   : >> { %v1149_v22 = vmul.f32 %v1144_v0, %v1109_v15  ;;  %v1122_v28 = vmul.f32 %v1117_v25, %v1103_v3  ;;  %v1136_v38 = vmul.f32 0.7978846, %v1131_v39  ;;  %1827 = vtanh.f32 %v1135_v19 }
 0x3e5   : >> { %v1153_v53 = vpack.c.bf16 %v1149_v22, %v1148_v4  ;;  %1829 = vtanh.f32 %v1136_v38  ;;  %v1127_v20 = vmul.f32 %v1122_v28, %v1103_v3 }
 0x3e7   : >> { %1642 = vmatmul.mubr.bf16.vlgmr.msra.gmra.mrb[0].mxu1 %v1153_v53  ;;  %v1132_v12 = vadd.f32 %v1127_v20, %v1103_v3 }
 0x3e8   : >> { %1645 = vmatprep.mubr.msk.bf16.mxu1 %vm2043_vm13, %v2042_v31 }
 0x3e9   : >> { %v1137_v29 = vmul.f32 0.7978846, %v1132_v12 }
 0x3eb   : >> { %1831 = vtanh.f32 %v1137_v29 }
 0x3ed   : >> { %v1828_v33 = vpop.eup %1827 }
 0x3ee   : >> { %v1145_v13 = vadd.f32 1.0, %v1828_v33 }
 0x3ef   : >> { %v1830_v43 = vpop.eup %1829 }
 0x3f0   : >> { %v1146_v7 = vadd.f32 1.0, %v1830_v43  ;;  %v1150_v16 = vmul.f32 %v1145_v13, %v1110_v44 }
 0x3f2   : >> { %v1151_v26 = vmul.f32 %v1146_v7, %v1111_v46 }
 0x3f4   : >> { %v1154_v37 = vpack.c.bf16 %v1151_v26, %v1150_v16  ;;  %v1538_v16 = vld [vmem:[%s2800_s2 + $0x3] ss:$0 sm:$0xff] (%p626_p4) }
 0x3f5   : >> { %v1832_v34 = vpop.eup %1831 }
 0x3f6   : >> { %1646 = vmatmul.mubr.bf16.gmra.mrb[4].mxu1 %v1154_v37  ;;  %v1147_v21 = vadd.f32 1.0, %v1832_v34  ;;  %v1539_v37 = vld [vmem:[%s2800_s2 + $0x4] ss:$0 sm:$0xff] (%p626_p4) }
 0x3f7   : >> { %1649 = vmatprep.mubr.msk.bf16.mxu1 %vm2043_vm13, %v2042_v31 }
 0x3f8   : >> { %v1152_v48 = vmul.f32 %v1147_v21, %v1112_v35 }
 0x3fa   : >> { %v1155_v54 = vpack.c.bf16 %v1152_v48, %v1152_v48 }
 0x3fe   : >> { %1650 = vmatmul.mubr.bf16.gmra.mrb[8].mxu1 %v1155_v54 }
 0x4ba   : >> { %v1260_v40 = vpop.f32.mrb[0].mxu1 }
 0x4bb   : >> { %v1261_v17 = vadd.f32 %v1260_v40, %v1177_v50  ;;  %v1643_v61 = vpop.f32.mrb[1].mxu1 }
 0x4bc   : >> { %v1263_v62 = vpop.f32.mrb[2].mxu1 }
 0x4bd   : >> { %v1286_v27 = vmul.f32 %v1285_v52, %v1261_v17  ;;  %v1264_v63 = vadd.f32 %v1263_v62, %v1177_v50  ;;  %v1644_v55 = vpop.f32.mrb[3].mxu1 }
 0x4bf   : >> { %v1291_v31 = vadd.f32 %v1286_v27, %v2441_v60  ;;  %v1287_v49 = vmul.f32 %v1285_v52, %v1264_v63 }
 0x4c1   : >> { %v1296_v58 = vsel %vm598_vm3, %v1291_v31, 0.0  ;;  %v1292_v1 = vadd.f32 %v1287_v49, %v2490_v23 }
 0x4c2   : >> { %1301 = vst [vmem:[#allocation2 + $0x8] sm:$0xff] %v1296_v58 }
 0x4c3   : >> { %v1297_v56 = vsel %vm599_vm4, %v1292_v1, 0.0 }
 0x4c4   : >> { %1302 = vst [vmem:[#allocation2 + $0x10] sm:$0xff] %v1297_v56 }
 0x4c9   : >> { %v1268_v57 = vpop.f32.mrb[4].mxu1 }
 0x4ca   : >> { %v1269_v36 = vadd.f32 %v1268_v57, %v1177_v50  ;;  %v1647_v6 = vpop.f32.mrb[5].mxu1 }
 0x4cb   : >> { %v1271_v2 = vpop.f32.mrb[6].mxu1 }
 0x4cc   : >> { %v1288_v8 = vmul.f32 %v1285_v52, %v1269_v36  ;;  %v1272_v42 = vadd.f32 %v1271_v2, %v1177_v50  ;;  %v1648_v3 = vpop.f32.mrb[7].mxu1 }
 0x4ce   : >> { %v1293_v60 = vadd.f32 %v1288_v8, %v2536_v10  ;;  %v1289_v51 = vmul.f32 %v1285_v52, %v1272_v42 }
 0x4d0   : >> { %v1298_v14 = vsel %vm600_vm5, %v1293_v60, 0.0  ;;  %v1294_v23 = vadd.f32 %v1289_v51, %v2568_v47 }
 0x4d1   : >> { %1303 = vst [vmem:[#allocation2 + $0x18] sm:$0xff] %v1298_v14  ;;  %v1276_v59 = vpop.f32.mrb[8].mxu1 }
 0x4d2   : >> { %v1299_v9 = vsel %vm601_vm7, %v1294_v23, 0.0  ;;  %v1277_v15 = vadd.f32 %v1276_v59, %v1177_v50  ;;  %v1651_v0 = vpop.f32.mrb[9].mxu1 }
 0x4d3   : >> { %1304 = vst [vmem:[#allocation2 + $0x20] sm:$0xff] %v1299_v9  ;;  %v1279_v25 = vpop.f32.mrb[10].mxu1  ;;  %628 = sbr.rel (!%p626_p4) target bundleno = 554 (0x22a), region = 117 }
 0x4d4   : >> { %v1290_v11 = vmul.f32 %v1285_v52, %v1277_v15  ;;  %v1652_v39 = vpop.f32.mrb[11].mxu1 }
 0x4d6   : >> { %v1295_v19 = vadd.f32 %v1290_v11, %v2596_v32 }
 0x4d8   : >> { %v1300_v10 = vsel %vm602_vm6, %v1295_v19, 0.0 }
 0x4d9   : >> { %1305 = vst [vmem:[#allocation2 + $0x28] sm:$0xff] %v1300_v10 }
 0x4da   : > { %v1306_v47 = vld [vmem:[#allocation2 + $0x20] sm:$0xff] }
 0x4db   : > { %1310 = vadd.xlane.f32.xlu0 %v1306_v47  ;;  %v1316_v22 = vmul.f32 %v1306_v47, %v1306_v47 }
 0x4dd   : > { %1318 = vadd.xlane.f32.xlu1 %v1316_v22 }
 0x4e0   : > { %v1307_v4 = vld [vmem:[#allocation2 + $0x28] sm:$0xff] }
 0x4e1   : > { %v1317_v28 = vmul.f32 %v1307_v4, %v1307_v4  ;;  %1312 = vadd.xlane.f32.xlu0 %v1307_v4 }
 0x4e3   : > { %1320 = vadd.xlane.f32.xlu1 %v1317_v28 }
 0x568   : > { %v1311_v38 = vpop.xlane.xlu0 %1310 }
 0x569   : > { %v1314_v32 = vmul.f32 0.03125, %v1311_v38 }
 0x56a   : > { %v1319_v53 = vpop.xlane.xlu1 %1318 }
 0x56b   : > { %v1324_v20 = vmul.f32 %v1314_v32, %v1314_v32  ;;  %v1322_v12 = vmul.f32 0.03125, %v1319_v53  ;;  %v1330_v46 = vsub.f32 %v1306_v47, %v1314_v32 }
 0x56d   : > { %v1326_v33 = vsub.f32 %v1322_v12, %v1324_v20 }
 0x56e   : > { %v1313_v29 = vpop.xlane.xlu0 %1312 }
 0x56f   : > { %v1315_v13 = vmul.f32 0.03125, %v1313_v29  ;;  %v1328_v44 = vmax.f32 %v1326_v33, 0.0 }
 0x570   : > { %v1321_v43 = vpop.xlane.xlu1 %1320 }
 0x571   : > { %v1325_v5 = vmul.f32 %v1315_v13, %v1315_v13  ;;  %v1323_v18 = vmul.f32 0.03125, %v1321_v43  ;;  %v1332_v24 = vadd.f32 1e-05, %v1328_v44  ;;  %v1331_v34 = vsub.f32 %v1307_v4, %v1315_v13 }
 0x573   : > { %v1327_v30 = vsub.f32 %v1323_v18, %v1325_v5  ;;  %1833 = vrsqrt.f32 %v1332_v24 }
 0x575   : > { %v1329_v41 = vmax.f32 %v1327_v30, 0.0 }
 0x577   : > { %v1333_v45 = vadd.f32 1e-05, %v1329_v41 }
 0x579   : > { %1835 = vrsqrt.f32 %v1333_v45 }
 0x57d   : > { %v1834_v7 = vpop.eup %1833 }
 0x57e   : > { %v1336_v26 = vmul.f32 %v1834_v7, %v1330_v46 }
 0x580   : > { %v1342_v35 = vmul.f32 %v1538_v16, %v1336_v26 }
 0x582   : > { %v1348_v54 = vadd.f32 %v1539_v37, %v1342_v35 }
 0x583   : > { %v1836_v21 = vpop.eup %1835 }
 0x584   : > { %v1337_v48 = vmul.f32 %v1836_v21, %v1331_v34  ;;  %1350 = vst [vmem:[%s2425_s10] sm:$0xff] %v1348_v54 }
 0x586   : > { %v1343_v50 = vmul.f32 %v1538_v16, %v1337_v48 }
 0x588   : > { %v1349_v52 = vadd.f32 %v1539_v37, %v1343_v50 }
 0x58a   : > { %1351 = vst [vmem:[%s2425_s10 + $0x8] sm:$0xff] %v1349_v52 }
 0x58b   : > { %1936 = shalt.err (!%p1933_p12)
}
 0x58c   : > { %s1937_s10 = scalar_lea.hbm %s2741_s20, 256  ;;  %s1941_s19 = scalar_lea.hbm %s2848_s14, 2048 }
 0x58d   : > { %p1938_p1 = scmp.ne.s32.totalorder %s2741_s20, %s1937_s10  ;;  %p1942_p9 = scmp.lt.u32.totalorder %s2741_s20, %s2848_s14 }
 0x58e   : > { %p1943_p0 = scmp.lt.u32.totalorder %s1941_s19, %s1937_s10  ;;  %p1945_p10 = scmp.lt.u32.totalorder %s1937_s10, %s2741_s20 }
 0x58f   : > { %p1939_p2 = pnand %p1938_p1, %p2240_p8 }
 0x590   : > { %p1944_p4 = por %p1943_p0, %p1942_p9 }
 0x591   : > { %p1940_p5 = pneg %p1939_p2 }
 0x592   : > { %p1946_p6 = por %p1945_p10, %p1944_p4 }
 0x594   : > { %p1947_p11 = pnand %p1946_p6, %p1940_p5 }
 0x596   : > { %1950 = shalt.err (!%p1947_p11)
}
 0x597   : > { %s2045_s15 = smov 128   ;;  %s2046_s18 = smov 8  }
 0x598   : > { %1675 = dma.vmem_to_hbm [thread:$0]  (%p2240_p8), %s2743_s25, 256, %s2741_s20, %s1353_s23, %s2045_s15, %s2045_s15, %s2046_s18  }
 0x599 PF: > { %s2849_s30 = sld [smem:[#allocation13_spill]]  ;;  %s2850_s9 = sld [smem:[#allocation16_spill]] }
 0x59a   : > { %p1697_p13 = scmp.ge.s32.totalorder %s2029_s12, 2 }
 0x59f   : > { %s1383_s22 = sand.u32 1, %s2849_s30   ;;  %p2851_p3 = scmp.ne.s32.totalorder %s2850_s9, 0 }
 0x5a0   : > { %s1384_s21 = scalar_lea.sflag [#allocation5], %s1383_s22 }
 0x5a1   : > { %p1689_p7 = pnand %p1697_p13, %p2851_p3 }
 0x5a3   : > { %1996 = dma.done.wait (!%p1689_p7), %s1384_s21, 256  }
 0x5a4   : > { %1998 = vsyncadd (!%p1689_p7), %s1384_s21, 4294967040  ;;  %s25_s12 = sadd.s32 1, %s2029_s12   ;;  %s2852_s30 = sld [smem:[#allocation15_spill]] }
 0x5a5   : > { %p22_p12 = scmp.ge.s32.totalorder %s25_s12, 10   ;;  %s2853_s10 = sld [smem:[#allocation17_spill]] }
 0x5a6   : > { %s2854_s24 = sld [smem:[#allocation18_spill]]  ;;  %s2855_s27 = smov %s2005_s28 }
 0x5a7   : > { %s2856_s28 = smov %s2009_s29  ;;  %s2857_s29 = smov %s2259_s5 }
 0x5a8   : > { %s2858_s9 = smov %s2025_s11  ;;  %24 = sbr.rel (!%p22_p12) target bundleno = 13 (0xd), region = 128 }
 0x5ac   : > { %s2859_s11 = smov %s2854_s24 }
 0x5af   :  { %1389 = vsyncpa [#allocation4], 1 }
 0x5b0   :  { %1391 = vsyncpa [#allocation4 + $0x1], 1 }
 0x5b1   :  { %1392 = vsyncpa [#allocation7], 1 }
 0x5b2   :  { %1393 = vsyncpa [#allocation5], 1 }
 0x5b3   :  { %1395 = vsyncpa [#allocation5 + $0x1], 1 }

</bundles_post_ra>
